<compile_context>
chip_gen: v7x
topology: tpu7x:2x2x1
jax: 0.10.0
libtpu: 0.0.40
codegen_flags: <defaults>
</compile_context>

<pallas_src>
import functools

import jax
import jax.numpy as jnp
from jax import lax
from jax.experimental import pallas as pl
from jax.experimental.pallas import tpu as pltpu


def _attention_kernel(xq_ref, xkv_ref, wq_ref, wk_ref, wv_ref, wo_ref, bo_ref,
                      g_ref, b_ref, o_ref,
                      k_hm_ref, v_hm_ref, bvsum_ref, oacc_ref,
                      *, heads, dh, eps, n_keys):
    # ---- Once per batch element (query-tile 0): fused K/V projection. ----
    # Two lane-dense (N, D) @ (D, D) matmuls (full-width MXU passes), then a
    # single head split into head-major scratch.  The split is amortized over
    # all q-tiles of this batch element; the per-q-tile path below indexes
    # heads on the leading dim only.
    @pl.when(pl.program_id(1) == 0)
    def _():
        xkv = xkv_ref[0]                                               # (N, D) bf16
        k_flat = jnp.dot(xkv, wk_ref[...], preferred_element_type=jnp.float32)
        v_flat = jnp.dot(xkv, wv_ref[...], preferred_element_type=jnp.float32)
        for h in range(heads):
            sl = slice(h * dh, (h + 1) * dh)
            v_h = v_flat[:, sl]                                        # (N, dh) f32
            k_hm_ref[h] = k_flat[:, sl].astype(jnp.bfloat16)
            # attn = normed * g + b ;  out_h = attn @ v_h
            #      = normed @ (g_h * v_h) + b_h * colsum(v_h)
            # -> fold norm_g into the head-major V scratch and precompute the
            #    rank-1 bias term once per batch element.
            v_hm_ref[h] = (g_ref[h] * v_h).astype(jnp.bfloat16)
            bvsum_ref[h] = b_ref[h] * jnp.sum(v_h, axis=0, keepdims=True)

    # ---- Per query tile. ----
    # Fused Q projection; scale (dim**-0.5) already folded into wq.
    q = jnp.dot(xq_ref[0], wq_ref[...], preferred_element_type=jnp.float32)
    # Head-major Q: the one remaining per-head lane split (intrinsic for a
    # fused, lane-packed Q projection); K / V / bias are already head-major.
    q_hm = jnp.stack([q[:, h * dh:(h + 1) * dh] for h in range(heads)],
                     axis=0).astype(jnp.bfloat16)                      # (H, TQ, dh)

    # Head-batched score matmul -> (H, TQ, N) f32.
    dots = jnp.einsum('hqd,hkd->hqk', q_hm, k_hm_ref[...],
                      preferred_element_type=jnp.float32)

    # One-pass normalization (f32): mean and variance from a single sweep.
    inv_n = 1.0 / float(n_keys)
    row_sum = jnp.sum(dots, axis=-1, keepdims=True)
    row_sumsq = jnp.sum(dots * dots, axis=-1, keepdims=True)
    mean = row_sum * inv_n
    var = row_sumsq * inv_n - mean * mean                              # f32, +eps below
    col = lax.rsqrt(var + eps)                                         # (H,TQ,1) EUP
    attn_w = ((dots - mean) * col).astype(jnp.bfloat16)                # (H, TQ, N)

    # Head-batched attention @ (g*V), plus the analytic b*colsum(V) bias term.
    av = jnp.einsum('hqk,hkd->hqd', attn_w, v_hm_ref[...],
                    preferred_element_type=jnp.float32)                # (H, TQ, dh)
    av = av + bvsum_ref[...]

    # Assemble (TQ, D) at static lane offsets (no concatenate), then one fused
    # output projection.
    for h in range(heads):
        oacc_ref[:, h * dh:(h + 1) * dh] = av[h]
    y = jnp.dot(oacc_ref[...].astype(jnp.bfloat16), wo_ref[...],
                preferred_element_type=jnp.float32)
    o_ref[0] = (y + bo_ref[...]).astype(o_ref.dtype)

    # TODO(synk): causal=True (cumulative-mean normalization + triu mask) and
    # shared_kv=True are not implemented; the wrapper rejects those configs.
    # TODO(synk): for very long N on v7x (64 MiB VMEM), stream K/V tiles with
    # a third grid axis (the normalization decomposes into running sum/sumsq)
    # and/or hoist the K/V projection out of the kernel so the q-tile axis can
    # be megacore-parallel when batch == 1.


def attention_forward(x, w_qkv, w_out, b_out, norm_g, norm_b, *, heads,
                      q_tile=None, causal=False, shared_kv=False,
                      out_dtype=None):
    """x: (B, N, D) f32.  w_qkv: (3D, D) (torch Linear layout), w_out: (D, D),
    b_out: (D,), norm_g/norm_b: (1, heads, 1, 1)."""
    if causal:
        raise NotImplementedError("causal=True path not implemented")
    if shared_kv:
        raise NotImplementedError("shared_kv=True path not implemented")

    B, N, D = x.shape
    assert D % heads == 0
    dh = D // heads
    scale = float(D) ** (-0.5)        # module uses dim ** -0.5 (full model dim)
    if out_dtype is None:
        out_dtype = x.dtype           # pass jnp.bfloat16 to halve writeback (v5e)

    if q_tile is None:
        # Bigger tiles amortize the ~0.35us per-grid-step overhead and feed
        # the 256-wide MXU; keep a multiple of 16 for bf16 sublane packing.
        q_tile = N if N <= 256 else 256
    assert N % q_tile == 0 and (q_tile % 8 == 0 or q_tile == N)

    # Fused, lane-dense weight layouts.  torch Linear weight is (out, in); the
    # qkv output channels are ordered (qkv, head, dh), so of w_qkv.T columns
    # [0, D) are the Q projection, [D, 2D) K, [2D, 3D) V.
    w_full = w_qkv.T.astype(jnp.float32)                      # (D, 3D)
    wq = (w_full[:, :D] * scale).astype(jnp.bfloat16)         # (D, D), scale folded
    wk = w_full[:, D:2 * D].astype(jnp.bfloat16)              # (D, D)
    wv = w_full[:, 2 * D:].astype(jnp.bfloat16)               # (D, D)
    wo = w_out.T.astype(jnp.bfloat16)                         # (D, D)
    bo = b_out.reshape(1, D).astype(jnp.float32)              # (1, D)
    g = norm_g.reshape(heads).astype(jnp.float32)             # (H,) -> SMEM
    bt = norm_b.reshape(heads).astype(jnp.float32)            # (H,) -> SMEM

    x_bf = x.astype(jnp.bfloat16)

    kernel = functools.partial(_attention_kernel, heads=heads, dh=dh,
                               eps=1e-8, n_keys=N)

    # VMEM budget: double-buffered inputs/output tiles + persistent scratch,
    # clamped to [32 MiB, 96 MiB] so the kernel also fits v7x's 64 MiB VMEM.
    vmem_needed = (2 * q_tile * D * 2            # xq tile (bf16, double-buffered)
                   + 2 * N * D * 2               # xkv block (bf16, double-buffered)
                   + 2 * 4 * D * D * 2           # wq/wk/wv/wo (bf16, double-buffered)
                   + 2 * q_tile * D * 4          # output tile (double-buffered)
                   + 2 * N * D * 2               # K + g*V head-major scratch
                   + q_tile * D * 4              # head-concat accumulator
                   + heads * 8 * 128 * 4)        # b*colsum(V) scratch (padded)
    vmem_limit = int(min(96 * 2**20,
                         max(32 * 2**20, vmem_needed * 3 // 2 + (4 << 20))))

    cost = pl.CostEstimate(
        flops=(2 * B * N * D * 3 * D           # QKV projections
               + 4 * B * heads * N * N * dh    # scores + attention @ V
               + 2 * B * N * D * D),           # output projection
        transcendentals=B * heads * N,         # one rsqrt per (head, query row)
        bytes_accessed=2 * B * N * D * 2 + B * N * D * 4 + 4 * D * D * 2)

    return pl.pallas_call(
        kernel,
        out_shape=jax.ShapeDtypeStruct((B, N, D), out_dtype),
        grid=(B, N // q_tile),
        in_specs=[
            pl.BlockSpec((1, q_tile, D), lambda b, t: (b, t, 0)),   # x (query tile)
            pl.BlockSpec((1, N, D), lambda b, t: (b, 0, 0)),        # x (K/V source)
            pl.BlockSpec((D, D), lambda b, t: (0, 0)),              # wq (scaled)
            pl.BlockSpec((D, D), lambda b, t: (0, 0)),              # wk
            pl.BlockSpec((D, D), lambda b, t: (0, 0)),              # wv
            pl.BlockSpec((D, D), lambda b, t: (0, 0)),              # wo
            pl.BlockSpec((1, D), lambda b, t: (0, 0)),              # bo
            pl.BlockSpec(memory_space=pltpu.MemorySpace.SMEM),      # norm_g
            pl.BlockSpec(memory_space=pltpu.MemorySpace.SMEM),      # norm_b
        ],
        out_specs=pl.BlockSpec((1, q_tile, D), lambda b, t: (b, t, 0)),
        scratch_shapes=[
            pltpu.VMEM((heads, N, dh), jnp.bfloat16),    # K, head-major
            pltpu.VMEM((heads, N, dh), jnp.bfloat16),    # g*V, head-major
            pltpu.VMEM((heads, 1, dh), jnp.float32),     # b*colsum(V)
            pltpu.VMEM((q_tile, D), jnp.float32),        # head-concat accumulator
        ],
        compiler_params=pltpu.CompilerParams(
            # q-tile axis carries the per-batch K/V scratch -> "arbitrary";
            # batch axis is megacore-parallel.
            dimension_semantics=("parallel", "arbitrary"),
            vmem_limit_bytes=vmem_limit,
        ),
        cost_estimate=cost,
    )(x_bf, x_bf, wq, wk, wv, wo, bo, g, bt)


def attention_reference(x, w_qkv, w_out, b_out, norm_g, norm_b, *, heads):
    """Pure-JAX (f32, HIGHEST precision) mirror of the PyTorch forward."""
    B, N, D = x.shape
    dh = D // heads
    scale = float(D) ** (-0.5)
    hp = lax.Precision.HIGHEST

    qkv = jnp.einsum('bnd,ed->bne', x, w_qkv, precision=hp)          # (B, N, 3D)
    qkv = qkv.reshape(B, N, 3, heads, dh).transpose(2, 0, 3, 1, 4)   # (3, B, H, N, dh)
    q, k, v = qkv[0], qkv[1], qkv[2]

    dots = jnp.einsum('bhid,bhjd->bhij', q, k, precision=hp) * scale
    t = dots - jnp.mean(dots, axis=-1, keepdims=True)
    s = jnp.mean(t * t, axis=-1, keepdims=True)
    normed = t * lax.rsqrt(s + 1e-8)
    attn = normed * norm_g + norm_b

    out = jnp.einsum('bhij,bhjd->bhid', attn, v, precision=hp)       # (B, H, N, dh)
    out = out.transpose(0, 2, 1, 3).reshape(B, N, D)
    return jnp.einsum('bnd,ed->bne', out, w_out, precision=hp) + b_out


if __name__ == "__main__":
    B, N, D, H = 2, 16, 128, 8

    key = jax.random.PRNGKey(0)
    kx, kqkv, kout, kbout, kg, kb = jax.random.split(key, 6)

    x = jax.random.normal(kx, (B, N, D), dtype=jnp.float32)
    # nn.Linear(dim, dim*3, bias=False): weight shape (3D, D)
    w_qkv = jax.random.normal(kqkv, (3 * D, D), dtype=jnp.float32) / jnp.sqrt(D)
    # nn.Linear(dim, dim): weight (D, D), bias (D,)
    w_out = jax.random.normal(kout, (D, D), dtype=jnp.float32) / jnp.sqrt(D)
    b_out = jax.random.normal(kbout, (D,), dtype=jnp.float32) * 0.1
    # norm_g / norm_b: shape (1, heads, 1, 1)
    norm_g = 1.0 + 0.1 * jax.random.normal(kg, (1, H, 1, 1), dtype=jnp.float32)
    norm_b = 0.1 * jax.random.normal(kb, (1, H, 1, 1), dtype=jnp.float32)

    # q_tile=8 exercises the multi-q-tile carry of the per-batch K/V scratch.
    y = attention_forward(x, w_qkv, w_out, b_out, norm_g, norm_b,
                          heads=H, q_tile=8)
    y = jax.block_until_ready(y)

    y_ref = attention_reference(x, w_qkv, w_out, b_out, norm_g, norm_b, heads=H)
    assert y.shape == (B, N, D) and y.dtype == jnp.float32

    err = float(jnp.max(jnp.abs(y - y_ref)))
    ref_scale = float(jnp.max(jnp.abs(y_ref)))
    # bf16 MXU operands / f32 accumulation: expect well under 1% of the output
    # dynamic range vs. the f32 HIGHEST-precision reference.
    assert err <= 0.03 * ref_scale + 1e-3, (err, ref_scale)

    print("KERNEL_OK")
</pallas_src>

<mosaic_0001>
module attributes {stable_mosaic.version = 11 : i64} {
  func.func @_attention_kernel(%arg0: i32, %arg1: i32, %arg2: memref<1x8x128xbf16, #tpu.memory_space<vmem>>, %arg3: memref<1x16x128xbf16, #tpu.memory_space<vmem>>, %arg4: memref<128x128xbf16, #tpu.memory_space<vmem>>, %arg5: memref<128x128xbf16, #tpu.memory_space<vmem>>, %arg6: memref<128x128xbf16, #tpu.memory_space<vmem>>, %arg7: memref<128x128xbf16, #tpu.memory_space<vmem>>, %arg8: memref<1x128xf32, #tpu.memory_space<vmem>>, %arg9: memref<8xf32, #tpu.memory_space<smem>>, %arg10: memref<8xf32, #tpu.memory_space<smem>>, %arg11: memref<1x8x128xf32, #tpu.memory_space<vmem>>, %arg12: memref<8x16x16xbf16, #tpu.memory_space<vmem>>, %arg13: memref<8x16x16xbf16, #tpu.memory_space<vmem>>, %arg14: memref<8x1x16xf32, #tpu.memory_space<vmem>>, %arg15: memref<8x128xf32, #tpu.memory_space<vmem>>) attributes {dimension_semantics = [#tpu.dimension_semantics<parallel>, #tpu.dimension_semantics<arbitrary>], iteration_bounds = array<i64: 2, 2>, scalar_prefetch = 0 : i64, scratch_operands = 4 : i64, tpu.core_type = #tpu.core_type<tc>, window_params = [{transform_indices = @transform_0, window_bounds = array<i64: 1, 8, 128>}, {transform_indices = @transform_1, window_bounds = array<i64: 1, 16, 128>}, {pipeline_mode = #tpu.pipeline_mode<synchronous>, transform_indices = @transform_2, window_bounds = array<i64: 128, 128>}, {pipeline_mode = #tpu.pipeline_mode<synchronous>, transform_indices = @transform_3, window_bounds = array<i64: 128, 128>}, {pipeline_mode = #tpu.pipeline_mode<synchronous>, transform_indices = @transform_4, window_bounds = array<i64: 128, 128>}, {pipeline_mode = #tpu.pipeline_mode<synchronous>, transform_indices = @transform_5, window_bounds = array<i64: 128, 128>}, {pipeline_mode = #tpu.pipeline_mode<synchronous>, transform_indices = @transform_6, window_bounds = array<i64: 1, 128>}, {transform_indices = @transform_7, window_bounds = array<i64: 8>}, {transform_indices = @transform_8, window_bounds = array<i64: 8>}, {transform_indices = @transform_9, window_bounds = array<i64: 1, 8, 128>}]} {
    %c0_i32 = arith.constant 0 : i32
    %0 = arith.cmpi eq, %arg1, %c0_i32 : i32
    %1 = arith.extui %0 : i1 to i32
    %c0_i32_0 = arith.constant 0 : i32
    %2 = arith.cmpi ne, %1, %c0_i32_0 : i32
    scf.if %2 {
      %c0_40 = arith.constant 0 : index
      %c0_41 = arith.constant 0 : index
      %c0_42 = arith.constant 0 : index
      %85 = vector.load %arg3[%c0_40, %c0_41, %c0_42] : memref<1x16x128xbf16, #tpu.memory_space<vmem>>, vector<1x16x128xbf16>
      %86 = vector.shape_cast %85 : vector<1x16x128xbf16> to vector<16x128xbf16>
      %c0_43 = arith.constant 0 : index
      %c0_44 = arith.constant 0 : index
      %87 = vector.load %arg5[%c0_43, %c0_44] : memref<128x128xbf16, #tpu.memory_space<vmem>>, vector<128x128xbf16>
      %cst_45 = arith.constant dense<0.000000e+00> : vector<16x128xf32>
      %88 = tpu.matmul %86, %87, %cst_45 {dimension_numbers = #tpu.dot_dimension_numbers<[1], [0], [0], [1], [0, 0, 1, 1], [], []>} : vector<16x128xbf16>, vector<128x128xbf16>, vector<16x128xf32> -> vector<16x128xf32>
      %c0_46 = arith.constant 0 : index
      %c0_47 = arith.constant 0 : index
      %89 = vector.load %arg6[%c0_46, %c0_47] : memref<128x128xbf16, #tpu.memory_space<vmem>>, vector<128x128xbf16>
      %cst_48 = arith.constant dense<0.000000e+00> : vector<16x128xf32>
      %90 = tpu.matmul %86, %89, %cst_48 {dimension_numbers = #tpu.dot_dimension_numbers<[1], [0], [0], [1], [0, 0, 1, 1], [], []>} : vector<16x128xbf16>, vector<128x128xbf16>, vector<16x128xf32> -> vector<16x128xf32>
      %91 = vector.extract_strided_slice %90 {offsets = [0, 0], sizes = [16, 16], strides = [1, 1]} : vector<16x128xf32> to vector<16x16xf32>
      %92 = vector.extract_strided_slice %88 {offsets = [0, 0], sizes = [16, 16], strides = [1, 1]} : vector<16x128xf32> to vector<16x16xf32>
      %93 = arith.truncf %92 : vector<16x16xf32> to vector<16x16xbf16>
      %c0_49 = arith.constant 0 : index
      %c0_50 = arith.constant 0 : index
      %c0_51 = arith.constant 0 : index
      %94 = vector.load %arg12[%c0_49, %c0_50, %c0_51] : memref<8x16x16xbf16, #tpu.memory_space<vmem>>, vector<1x16x16xbf16>
      %95 = vector.shape_cast %94 : vector<1x16x16xbf16> to vector<16x16xbf16>
      %96 = vector.shape_cast %93 : vector<16x16xbf16> to vector<1x16x16xbf16>
      tpu.vector_store %arg12[%c0_49, %c0_50, %c0_51], %96 {strides = array<i32>} : memref<8x16x16xbf16, #tpu.memory_space<vmem>>, vector<1x16x16xbf16>,
      %c0_52 = arith.constant 0 : index
      %97 = memref.load %arg9[%c0_52] : memref<8xf32, #tpu.memory_space<smem>>
      %98 = vector.broadcast %97 : f32 to vector<16x16xf32>
      %99 = arith.mulf %98, %91 : vector<16x16xf32>
      %100 = arith.truncf %99 : vector<16x16xf32> to vector<16x16xbf16>
      %c0_53 = arith.constant 0 : index
      %c0_54 = arith.constant 0 : index
      %c0_55 = arith.constant 0 : index
      %101 = vector.load %arg13[%c0_53, %c0_54, %c0_55] : memref<8x16x16xbf16, #tpu.memory_space<vmem>>, vector<1x16x16xbf16>
      %102 = vector.shape_cast %101 : vector<1x16x16xbf16> to vector<16x16xbf16>
      %103 = vector.shape_cast %100 : vector<16x16xbf16> to vector<1x16x16xbf16>
      tpu.vector_store %arg13[%c0_53, %c0_54, %c0_55], %103 {strides = array<i32>} : memref<8x16x16xbf16, #tpu.memory_space<vmem>>, vector<1x16x16xbf16>,
      %c0_56 = arith.constant 0 : index
      %104 = memref.load %arg10[%c0_56] : memref<8xf32, #tpu.memory_space<smem>>
      %cst_57 = arith.constant dense<0.000000e+00> : vector<16xf32>
      %105 = vector.multi_reduction <add>, %91, %cst_57 [0] : vector<16x16xf32> to vector<16xf32>
      %106 = vector.shape_cast %105 : vector<16xf32> to vector<1x16xf32>
      %107 = vector.broadcast %104 : f32 to vector<1x16xf32>
      %108 = arith.mulf %107, %106 : vector<1x16xf32>
      %c0_58 = arith.constant 0 : index
      %c0_59 = arith.constant 0 : index
      %c0_60 = arith.constant 0 : index
      %109 = vector.load %arg14[%c0_58, %c0_59, %c0_60] : memref<8x1x16xf32, #tpu.memory_space<vmem>>, vector<1x1x16xf32>
      %110 = vector.shape_cast %109 : vector<1x1x16xf32> to vector<1x16xf32>
      %111 = vector.shape_cast %108 : vector<1x16xf32> to vector<1x1x16xf32>
      tpu.vector_store %arg14[%c0_58, %c0_59, %c0_60], %111 {strides = array<i32>} : memref<8x1x16xf32, #tpu.memory_space<vmem>>, vector<1x1x16xf32>,
      %112 = vector.extract_strided_slice %90 {offsets = [0, 16], sizes = [16, 16], strides = [1, 1]} : vector<16x128xf32> to vector<16x16xf32>
      %113 = vector.extract_strided_slice %88 {offsets = [0, 16], sizes = [16, 16], strides = [1, 1]} : vector<16x128xf32> to vector<16x16xf32>
      %114 = arith.truncf %113 : vector<16x16xf32> to vector<16x16xbf16>
      %c1 = arith.constant 1 : index
      %c0_61 = arith.constant 0 : index
      %c0_62 = arith.constant 0 : index
      %115 = vector.load %arg12[%c1, %c0_61, %c0_62] : memref<8x16x16xbf16, #tpu.memory_space<vmem>>, vector<1x16x16xbf16>
      %116 = vector.shape_cast %115 : vector<1x16x16xbf16> to vector<16x16xbf16>
      %117 = vector.shape_cast %114 : vector<16x16xbf16> to vector<1x16x16xbf16>
      tpu.vector_store %arg12[%c1, %c0_61, %c0_62], %117 {strides = array<i32>} : memref<8x16x16xbf16, #tpu.memory_space<vmem>>, vector<1x16x16xbf16>,
      %c1_63 = arith.constant 1 : index
      %118 = memref.load %arg9[%c1_63] : memref<8xf32, #tpu.memory_space<smem>>
      %119 = vector.broadcast %118 : f32 to vector<16x16xf32>
      %120 = arith.mulf %119, %112 : vector<16x16xf32>
      %121 = arith.truncf %120 : vector<16x16xf32> to vector<16x16xbf16>
      %c1_64 = arith.constant 1 : index
      %c0_65 = arith.constant 0 : index
      %c0_66 = arith.constant 0 : index
      %122 = vector.load %arg13[%c1_64, %c0_65, %c0_66] : memref<8x16x16xbf16, #tpu.memory_space<vmem>>, vector<1x16x16xbf16>
      %123 = vector.shape_cast %122 : vector<1x16x16xbf16> to vector<16x16xbf16>
      %124 = vector.shape_cast %121 : vector<16x16xbf16> to vector<1x16x16xbf16>
      tpu.vector_store %arg13[%c1_64, %c0_65, %c0_66], %124 {strides = array<i32>} : memref<8x16x16xbf16, #tpu.memory_space<vmem>>, vector<1x16x16xbf16>,
      %c1_67 = arith.constant 1 : index
      %125 = memref.load %arg10[%c1_67] : memref<8xf32, #tpu.memory_space<smem>>
      %cst_68 = arith.constant dense<0.000000e+00> : vector<16xf32>
      %126 = vector.multi_reduction <add>, %112, %cst_68 [0] : vector<16x16xf32> to vector<16xf32>
      %127 = vector.shape_cast %126 : vector<16xf32> to vector<1x16xf32>
      %128 = vector.broadcast %125 : f32 to vector<1x16xf32>
      %129 = arith.mulf %128, %127 : vector<1x16xf32>
      %c1_69 = arith.constant 1 : index
      %c0_70 = arith.constant 0 : index
      %c0_71 = arith.constant 0 : index
      %130 = vector.load %arg14[%c1_69, %c0_70, %c0_71] : memref<8x1x16xf32, #tpu.memory_space<vmem>>, vector<1x1x16xf32>
      %131 = vector.shape_cast %130 : vector<1x1x16xf32> to vector<1x16xf32>
      %132 = vector.shape_cast %129 : vector<1x16xf32> to vector<1x1x16xf32>
      tpu.vector_store %arg14[%c1_69, %c0_70, %c0_71], %132 {strides = array<i32>} : memref<8x1x16xf32, #tpu.memory_space<vmem>>, vector<1x1x16xf32>,
      %133 = vector.extract_strided_slice %90 {offsets = [0, 32], sizes = [16, 16], strides = [1, 1]} : vector<16x128xf32> to vector<16x16xf32>
      %134 = vector.extract_strided_slice %88 {offsets = [0, 32], sizes = [16, 16], strides = [1, 1]} : vector<16x128xf32> to vector<16x16xf32>
      %135 = arith.truncf %134 : vector<16x16xf32> to vector<16x16xbf16>
      %c2 = arith.constant 2 : index
      %c0_72 = arith.constant 0 : index
      %c0_73 = arith.constant 0 : index
      %136 = vector.load %arg12[%c2, %c0_72, %c0_73] : memref<8x16x16xbf16, #tpu.memory_space<vmem>>, vector<1x16x16xbf16>
      %137 = vector.shape_cast %136 : vector<1x16x16xbf16> to vector<16x16xbf16>
      %138 = vector.shape_cast %135 : vector<16x16xbf16> to vector<1x16x16xbf16>
      tpu.vector_store %arg12[%c2, %c0_72, %c0_73], %138 {strides = array<i32>} : memref<8x16x16xbf16, #tpu.memory_space<vmem>>, vector<1x16x16xbf16>,
      %c2_74 = arith.constant 2 : index
      %139 = memref.load %arg9[%c2_74] : memref<8xf32, #tpu.memory_space<smem>>
      %140 = vector.broadcast %139 : f32 to vector<16x16xf32>
      %141 = arith.mulf %140, %133 : vector<16x16xf32>
      %142 = arith.truncf %141 : vector<16x16xf32> to vector<16x16xbf16>
      %c2_75 = arith.constant 2 : index
      %c0_76 = arith.constant 0 : index
      %c0_77 = arith.constant 0 : index
      %143 = vector.load %arg13[%c2_75, %c0_76, %c0_77] : memref<8x16x16xbf16, #tpu.memory_space<vmem>>, vector<1x16x16xbf16>
      %144 = vector.shape_cast %143 : vector<1x16x16xbf16> to vector<16x16xbf16>
      %145 = vector.shape_cast %142 : vector<16x16xbf16> to vector<1x16x16xbf16>
      tpu.vector_store %arg13[%c2_75, %c0_76, %c0_77], %145 {strides = array<i32>} : memref<8x16x16xbf16, #tpu.memory_space<vmem>>, vector<1x16x16xbf16>,
      %c2_78 = arith.constant 2 : index
      %146 = memref.load %arg10[%c2_78] : memref<8xf32, #tpu.memory_space<smem>>
      %cst_79 = arith.constant dense<0.000000e+00> : vector<16xf32>
      %147 = vector.multi_reduction <add>, %133, %cst_79 [0] : vector<16x16xf32> to vector<16xf32>
      %148 = vector.shape_cast %147 : vector<16xf32> to vector<1x16xf32>
      %149 = vector.broadcast %146 : f32 to vector<1x16xf32>
      %150 = arith.mulf %149, %148 : vector<1x16xf32>
      %c2_80 = arith.constant 2 : index
      %c0_81 = arith.constant 0 : index
      %c0_82 = arith.constant 0 : index
      %151 = vector.load %arg14[%c2_80, %c0_81, %c0_82] : memref<8x1x16xf32, #tpu.memory_space<vmem>>, vector<1x1x16xf32>
      %152 = vector.shape_cast %151 : vector<1x1x16xf32> to vector<1x16xf32>
      %153 = vector.shape_cast %150 : vector<1x16xf32> to vector<1x1x16xf32>
      tpu.vector_store %arg14[%c2_80, %c0_81, %c0_82], %153 {strides = array<i32>} : memref<8x1x16xf32, #tpu.memory_space<vmem>>, vector<1x1x16xf32>,
      %154 = vector.extract_strided_slice %90 {offsets = [0, 48], sizes = [16, 16], strides = [1, 1]} : vector<16x128xf32> to vector<16x16xf32>
      %155 = vector.extract_strided_slice %88 {offsets = [0, 48], sizes = [16, 16], strides = [1, 1]} : vector<16x128xf32> to vector<16x16xf32>
      %156 = arith.truncf %155 : vector<16x16xf32> to vector<16x16xbf16>
      %c3 = arith.constant 3 : index
      %c0_83 = arith.constant 0 : index
      %c0_84 = arith.constant 0 : index
      %157 = vector.load %arg12[%c3, %c0_83, %c0_84] : memref<8x16x16xbf16, #tpu.memory_space<vmem>>, vector<1x16x16xbf16>
      %158 = vector.shape_cast %157 : vector<1x16x16xbf16> to vector<16x16xbf16>
      %159 = vector.shape_cast %156 : vector<16x16xbf16> to vector<1x16x16xbf16>
      tpu.vector_store %arg12[%c3, %c0_83, %c0_84], %159 {strides = array<i32>} : memref<8x16x16xbf16, #tpu.memory_space<vmem>>, vector<1x16x16xbf16>,
      %c3_85 = arith.constant 3 : index
      %160 = memref.load %arg9[%c3_85] : memref<8xf32, #tpu.memory_space<smem>>
      %161 = vector.broadcast %160 : f32 to vector<16x16xf32>
      %162 = arith.mulf %161, %154 : vector<16x16xf32>
      %163 = arith.truncf %162 : vector<16x16xf32> to vector<16x16xbf16>
      %c3_86 = arith.constant 3 : index
      %c0_87 = arith.constant 0 : index
      %c0_88 = arith.constant 0 : index
      %164 = vector.load %arg13[%c3_86, %c0_87, %c0_88] : memref<8x16x16xbf16, #tpu.memory_space<vmem>>, vector<1x16x16xbf16>
      %165 = vector.shape_cast %164 : vector<1x16x16xbf16> to vector<16x16xbf16>
      %166 = vector.shape_cast %163 : vector<16x16xbf16> to vector<1x16x16xbf16>
      tpu.vector_store %arg13[%c3_86, %c0_87, %c0_88], %166 {strides = array<i32>} : memref<8x16x16xbf16, #tpu.memory_space<vmem>>, vector<1x16x16xbf16>,
      %c3_89 = arith.constant 3 : index
      %167 = memref.load %arg10[%c3_89] : memref<8xf32, #tpu.memory_space<smem>>
      %cst_90 = arith.constant dense<0.000000e+00> : vector<16xf32>
      %168 = vector.multi_reduction <add>, %154, %cst_90 [0] : vector<16x16xf32> to vector<16xf32>
      %169 = vector.shape_cast %168 : vector<16xf32> to vector<1x16xf32>
      %170 = vector.broadcast %167 : f32 to vector<1x16xf32>
      %171 = arith.mulf %170, %169 : vector<1x16xf32>
      %c3_91 = arith.constant 3 : index
      %c0_92 = arith.constant 0 : index
      %c0_93 = arith.constant 0 : index
      %172 = vector.load %arg14[%c3_91, %c0_92, %c0_93] : memref<8x1x16xf32, #tpu.memory_space<vmem>>, vector<1x1x16xf32>
      %173 = vector.shape_cast %172 : vector<1x1x16xf32> to vector<1x16xf32>
      %174 = vector.shape_cast %171 : vector<1x16xf32> to vector<1x1x16xf32>
      tpu.vector_store %arg14[%c3_91, %c0_92, %c0_93], %174 {strides = array<i32>} : memref<8x1x16xf32, #tpu.memory_space<vmem>>, vector<1x1x16xf32>,
      %175 = vector.extract_strided_slice %90 {offsets = [0, 64], sizes = [16, 16], strides = [1, 1]} : vector<16x128xf32> to vector<16x16xf32>
      %176 = vector.extract_strided_slice %88 {offsets = [0, 64], sizes = [16, 16], strides = [1, 1]} : vector<16x128xf32> to vector<16x16xf32>
      %177 = arith.truncf %176 : vector<16x16xf32> to vector<16x16xbf16>
      %c4 = arith.constant 4 : index
      %c0_94 = arith.constant 0 : index
      %c0_95 = arith.constant 0 : index
      %178 = vector.load %arg12[%c4, %c0_94, %c0_95] : memref<8x16x16xbf16, #tpu.memory_space<vmem>>, vector<1x16x16xbf16>
      %179 = vector.shape_cast %178 : vector<1x16x16xbf16> to vector<16x16xbf16>
      %180 = vector.shape_cast %177 : vector<16x16xbf16> to vector<1x16x16xbf16>
      tpu.vector_store %arg12[%c4, %c0_94, %c0_95], %180 {strides = array<i32>} : memref<8x16x16xbf16, #tpu.memory_space<vmem>>, vector<1x16x16xbf16>,
      %c4_96 = arith.constant 4 : index
      %181 = memref.load %arg9[%c4_96] : memref<8xf32, #tpu.memory_space<smem>>
      %182 = vector.broadcast %181 : f32 to vector<16x16xf32>
      %183 = arith.mulf %182, %175 : vector<16x16xf32>
      %184 = arith.truncf %183 : vector<16x16xf32> to vector<16x16xbf16>
      %c4_97 = arith.constant 4 : index
      %c0_98 = arith.constant 0 : index
      %c0_99 = arith.constant 0 : index
      %185 = vector.load %arg13[%c4_97, %c0_98, %c0_99] : memref<8x16x16xbf16, #tpu.memory_space<vmem>>, vector<1x16x16xbf16>
      %186 = vector.shape_cast %185 : vector<1x16x16xbf16> to vector<16x16xbf16>
      %187 = vector.shape_cast %184 : vector<16x16xbf16> to vector<1x16x16xbf16>
      tpu.vector_store %arg13[%c4_97, %c0_98, %c0_99], %187 {strides = array<i32>} : memref<8x16x16xbf16, #tpu.memory_space<vmem>>, vector<1x16x16xbf16>,
      %c4_100 = arith.constant 4 : index
      %188 = memref.load %arg10[%c4_100] : memref<8xf32, #tpu.memory_space<smem>>
      %cst_101 = arith.constant dense<0.000000e+00> : vector<16xf32>
      %189 = vector.multi_reduction <add>, %175, %cst_101 [0] : vector<16x16xf32> to vector<16xf32>
      %190 = vector.shape_cast %189 : vector<16xf32> to vector<1x16xf32>
      %191 = vector.broadcast %188 : f32 to vector<1x16xf32>
      %192 = arith.mulf %191, %190 : vector<1x16xf32>
      %c4_102 = arith.constant 4 : index
      %c0_103 = arith.constant 0 : index
      %c0_104 = arith.constant 0 : index
      %193 = vector.load %arg14[%c4_102, %c0_103, %c0_104] : memref<8x1x16xf32, #tpu.memory_space<vmem>>, vector<1x1x16xf32>
      %194 = vector.shape_cast %193 : vector<1x1x16xf32> to vector<1x16xf32>
      %195 = vector.shape_cast %192 : vector<1x16xf32> to vector<1x1x16xf32>
      tpu.vector_store %arg14[%c4_102, %c0_103, %c0_104], %195 {strides = array<i32>} : memref<8x1x16xf32, #tpu.memory_space<vmem>>, vector<1x1x16xf32>,
      %196 = vector.extract_strided_slice %90 {offsets = [0, 80], sizes = [16, 16], strides = [1, 1]} : vector<16x128xf32> to vector<16x16xf32>
      %197 = vector.extract_strided_slice %88 {offsets = [0, 80], sizes = [16, 16], strides = [1, 1]} : vector<16x128xf32> to vector<16x16xf32>
      %198 = arith.truncf %197 : vector<16x16xf32> to vector<16x16xbf16>
      %c5 = arith.constant 5 : index
      %c0_105 = arith.constant 0 : index
      %c0_106 = arith.constant 0 : index
      %199 = vector.load %arg12[%c5, %c0_105, %c0_106] : memref<8x16x16xbf16, #tpu.memory_space<vmem>>, vector<1x16x16xbf16>
      %200 = vector.shape_cast %199 : vector<1x16x16xbf16> to vector<16x16xbf16>
      %201 = vector.shape_cast %198 : vector<16x16xbf16> to vector<1x16x16xbf16>
      tpu.vector_store %arg12[%c5, %c0_105, %c0_106], %201 {strides = array<i32>} : memref<8x16x16xbf16, #tpu.memory_space<vmem>>, vector<1x16x16xbf16>,
      %c5_107 = arith.constant 5 : index
      %202 = memref.load %arg9[%c5_107] : memref<8xf32, #tpu.memory_space<smem>>
      %203 = vector.broadcast %202 : f32 to vector<16x16xf32>
      %204 = arith.mulf %203, %196 : vector<16x16xf32>
      %205 = arith.truncf %204 : vector<16x16xf32> to vector<16x16xbf16>
      %c5_108 = arith.constant 5 : index
      %c0_109 = arith.constant 0 : index
      %c0_110 = arith.constant 0 : index
      %206 = vector.load %arg13[%c5_108, %c0_109, %c0_110] : memref<8x16x16xbf16, #tpu.memory_space<vmem>>, vector<1x16x16xbf16>
      %207 = vector.shape_cast %206 : vector<1x16x16xbf16> to vector<16x16xbf16>
      %208 = vector.shape_cast %205 : vector<16x16xbf16> to vector<1x16x16xbf16>
      tpu.vector_store %arg13[%c5_108, %c0_109, %c0_110], %208 {strides = array<i32>} : memref<8x16x16xbf16, #tpu.memory_space<vmem>>, vector<1x16x16xbf16>,
      %c5_111 = arith.constant 5 : index
      %209 = memref.load %arg10[%c5_111] : memref<8xf32, #tpu.memory_space<smem>>
      %cst_112 = arith.constant dense<0.000000e+00> : vector<16xf32>
      %210 = vector.multi_reduction <add>, %196, %cst_112 [0] : vector<16x16xf32> to vector<16xf32>
      %211 = vector.shape_cast %210 : vector<16xf32> to vector<1x16xf32>
      %212 = vector.broadcast %209 : f32 to vector<1x16xf32>
      %213 = arith.mulf %212, %211 : vector<1x16xf32>
      %c5_113 = arith.constant 5 : index
      %c0_114 = arith.constant 0 : index
      %c0_115 = arith.constant 0 : index
      %214 = vector.load %arg14[%c5_113, %c0_114, %c0_115] : memref<8x1x16xf32, #tpu.memory_space<vmem>>, vector<1x1x16xf32>
      %215 = vector.shape_cast %214 : vector<1x1x16xf32> to vector<1x16xf32>
      %216 = vector.shape_cast %213 : vector<1x16xf32> to vector<1x1x16xf32>
      tpu.vector_store %arg14[%c5_113, %c0_114, %c0_115], %216 {strides = array<i32>} : memref<8x1x16xf32, #tpu.memory_space<vmem>>, vector<1x1x16xf32>,
      %217 = vector.extract_strided_slice %90 {offsets = [0, 96], sizes = [16, 16], strides = [1, 1]} : vector<16x128xf32> to vector<16x16xf32>
      %218 = vector.extract_strided_slice %88 {offsets = [0, 96], sizes = [16, 16], strides = [1, 1]} : vector<16x128xf32> to vector<16x16xf32>
      %219 = arith.truncf %218 : vector<16x16xf32> to vector<16x16xbf16>
      %c6 = arith.constant 6 : index
      %c0_116 = arith.constant 0 : index
      %c0_117 = arith.constant 0 : index
      %220 = vector.load %arg12[%c6, %c0_116, %c0_117] : memref<8x16x16xbf16, #tpu.memory_space<vmem>>, vector<1x16x16xbf16>
      %221 = vector.shape_cast %220 : vector<1x16x16xbf16> to vector<16x16xbf16>
      %222 = vector.shape_cast %219 : vector<16x16xbf16> to vector<1x16x16xbf16>
      tpu.vector_store %arg12[%c6, %c0_116, %c0_117], %222 {strides = array<i32>} : memref<8x16x16xbf16, #tpu.memory_space<vmem>>, vector<1x16x16xbf16>,
      %c6_118 = arith.constant 6 : index
      %223 = memref.load %arg9[%c6_118] : memref<8xf32, #tpu.memory_space<smem>>
      %224 = vector.broadcast %223 : f32 to vector<16x16xf32>
      %225 = arith.mulf %224, %217 : vector<16x16xf32>
      %226 = arith.truncf %225 : vector<16x16xf32> to vector<16x16xbf16>
      %c6_119 = arith.constant 6 : index
      %c0_120 = arith.constant 0 : index
      %c0_121 = arith.constant 0 : index
      %227 = vector.load %arg13[%c6_119, %c0_120, %c0_121] : memref<8x16x16xbf16, #tpu.memory_space<vmem>>, vector<1x16x16xbf16>
      %228 = vector.shape_cast %227 : vector<1x16x16xbf16> to vector<16x16xbf16>
      %229 = vector.shape_cast %226 : vector<16x16xbf16> to vector<1x16x16xbf16>
      tpu.vector_store %arg13[%c6_119, %c0_120, %c0_121], %229 {strides = array<i32>} : memref<8x16x16xbf16, #tpu.memory_space<vmem>>, vector<1x16x16xbf16>,
      %c6_122 = arith.constant 6 : index
      %230 = memref.load %arg10[%c6_122] : memref<8xf32, #tpu.memory_space<smem>>
      %cst_123 = arith.constant dense<0.000000e+00> : vector<16xf32>
      %231 = vector.multi_reduction <add>, %217, %cst_123 [0] : vector<16x16xf32> to vector<16xf32>
      %232 = vector.shape_cast %231 : vector<16xf32> to vector<1x16xf32>
      %233 = vector.broadcast %230 : f32 to vector<1x16xf32>
      %234 = arith.mulf %233, %232 : vector<1x16xf32>
      %c6_124 = arith.constant 6 : index
      %c0_125 = arith.constant 0 : index
      %c0_126 = arith.constant 0 : index
      %235 = vector.load %arg14[%c6_124, %c0_125, %c0_126] : memref<8x1x16xf32, #tpu.memory_space<vmem>>, vector<1x1x16xf32>
      %236 = vector.shape_cast %235 : vector<1x1x16xf32> to vector<1x16xf32>
      %237 = vector.shape_cast %234 : vector<1x16xf32> to vector<1x1x16xf32>
      tpu.vector_store %arg14[%c6_124, %c0_125, %c0_126], %237 {strides = array<i32>} : memref<8x1x16xf32, #tpu.memory_space<vmem>>, vector<1x1x16xf32>,
      %238 = vector.extract_strided_slice %90 {offsets = [0, 112], sizes = [16, 16], strides = [1, 1]} : vector<16x128xf32> to vector<16x16xf32>
      %239 = vector.extract_strided_slice %88 {offsets = [0, 112], sizes = [16, 16], strides = [1, 1]} : vector<16x128xf32> to vector<16x16xf32>
      %240 = arith.truncf %239 : vector<16x16xf32> to vector<16x16xbf16>
      %c7 = arith.constant 7 : index
      %c0_127 = arith.constant 0 : index
      %c0_128 = arith.constant 0 : index
      %241 = vector.load %arg12[%c7, %c0_127, %c0_128] : memref<8x16x16xbf16, #tpu.memory_space<vmem>>, vector<1x16x16xbf16>
      %242 = vector.shape_cast %241 : vector<1x16x16xbf16> to vector<16x16xbf16>
      %243 = vector.shape_cast %240 : vector<16x16xbf16> to vector<1x16x16xbf16>
      tpu.vector_store %arg12[%c7, %c0_127, %c0_128], %243 {strides = array<i32>} : memref<8x16x16xbf16, #tpu.memory_space<vmem>>, vector<1x16x16xbf16>,
      %c7_129 = arith.constant 7 : index
      %244 = memref.load %arg9[%c7_129] : memref<8xf32, #tpu.memory_space<smem>>
      %245 = vector.broadcast %244 : f32 to vector<16x16xf32>
      %246 = arith.mulf %245, %238 : vector<16x16xf32>
      %247 = arith.truncf %246 : vector<16x16xf32> to vector<16x16xbf16>
      %c7_130 = arith.constant 7 : index
      %c0_131 = arith.constant 0 : index
      %c0_132 = arith.constant 0 : index
      %248 = vector.load %arg13[%c7_130, %c0_131, %c0_132] : memref<8x16x16xbf16, #tpu.memory_space<vmem>>, vector<1x16x16xbf16>
      %249 = vector.shape_cast %248 : vector<1x16x16xbf16> to vector<16x16xbf16>
      %250 = vector.shape_cast %247 : vector<16x16xbf16> to vector<1x16x16xbf16>
      tpu.vector_store %arg13[%c7_130, %c0_131, %c0_132], %250 {strides = array<i32>} : memref<8x16x16xbf16, #tpu.memory_space<vmem>>, vector<1x16x16xbf16>,
      %c7_133 = arith.constant 7 : index
      %251 = memref.load %arg10[%c7_133] : memref<8xf32, #tpu.memory_space<smem>>
      %cst_134 = arith.constant dense<0.000000e+00> : vector<16xf32>
      %252 = vector.multi_reduction <add>, %238, %cst_134 [0] : vector<16x16xf32> to vector<16xf32>
      %253 = vector.shape_cast %252 : vector<16xf32> to vector<1x16xf32>
      %254 = vector.broadcast %251 : f32 to vector<1x16xf32>
      %255 = arith.mulf %254, %253 : vector<1x16xf32>
      %c7_135 = arith.constant 7 : index
      %c0_136 = arith.constant 0 : index
      %c0_137 = arith.constant 0 : index
      %256 = vector.load %arg14[%c7_135, %c0_136, %c0_137] : memref<8x1x16xf32, #tpu.memory_space<vmem>>, vector<1x1x16xf32>
      %257 = vector.shape_cast %256 : vector<1x1x16xf32> to vector<1x16xf32>
      %258 = vector.shape_cast %255 : vector<1x16xf32> to vector<1x1x16xf32>
      tpu.vector_store %arg14[%c7_135, %c0_136, %c0_137], %258 {strides = array<i32>} : memref<8x1x16xf32, #tpu.memory_space<vmem>>, vector<1x1x16xf32>,
    } else {
    }
    %c0 = arith.constant 0 : index
    %c0_1 = arith.constant 0 : index
    %c0_2 = arith.constant 0 : index
    %3 = vector.load %arg2[%c0, %c0_1, %c0_2] : memref<1x8x128xbf16, #tpu.memory_space<vmem>>, vector<1x8x128xbf16>
    %4 = vector.shape_cast %3 : vector<1x8x128xbf16> to vector<8x128xbf16>
    %c0_3 = arith.constant 0 : index
    %c0_4 = arith.constant 0 : index
    %5 = vector.load %arg4[%c0_3, %c0_4] : memref<128x128xbf16, #tpu.memory_space<vmem>>, vector<128x128xbf16>
    %cst = arith.constant dense<0.000000e+00> : vector<8x128xf32>
    %6 = tpu.matmul %4, %5, %cst {dimension_numbers = #tpu.dot_dimension_numbers<[1], [0], [0], [1], [0, 0, 1, 1], [], []>} : vector<8x128xbf16>, vector<128x128xbf16>, vector<8x128xf32> -> vector<8x128xf32>
    %7 = vector.extract_strided_slice %6 {offsets = [0, 0], sizes = [8, 16], strides = [1, 1]} : vector<8x128xf32> to vector<8x16xf32>
    %8 = vector.extract_strided_slice %6 {offsets = [0, 16], sizes = [8, 16], strides = [1, 1]} : vector<8x128xf32> to vector<8x16xf32>
    %9 = vector.extract_strided_slice %6 {offsets = [0, 32], sizes = [8, 16], strides = [1, 1]} : vector<8x128xf32> to vector<8x16xf32>
    %10 = vector.extract_strided_slice %6 {offsets = [0, 48], sizes = [8, 16], strides = [1, 1]} : vector<8x128xf32> to vector<8x16xf32>
    %11 = vector.extract_strided_slice %6 {offsets = [0, 64], sizes = [8, 16], strides = [1, 1]} : vector<8x128xf32> to vector<8x16xf32>
    %12 = vector.extract_strided_slice %6 {offsets = [0, 80], sizes = [8, 16], strides = [1, 1]} : vector<8x128xf32> to vector<8x16xf32>
    %13 = vector.extract_strided_slice %6 {offsets = [0, 96], sizes = [8, 16], strides = [1, 1]} : vector<8x128xf32> to vector<8x16xf32>
    %14 = vector.extract_strided_slice %6 {offsets = [0, 112], sizes = [8, 16], strides = [1, 1]} : vector<8x128xf32> to vector<8x16xf32>
    %15 = vector.shape_cast %7 : vector<8x16xf32> to vector<1x8x16xf32>
    %16 = vector.shape_cast %8 : vector<8x16xf32> to vector<1x8x16xf32>
    %17 = vector.shape_cast %9 : vector<8x16xf32> to vector<1x8x16xf32>
    %18 = vector.shape_cast %10 : vector<8x16xf32> to vector<1x8x16xf32>
    %19 = vector.shape_cast %11 : vector<8x16xf32> to vector<1x8x16xf32>
    %20 = vector.shape_cast %12 : vector<8x16xf32> to vector<1x8x16xf32>
    %21 = vector.shape_cast %13 : vector<8x16xf32> to vector<1x8x16xf32>
    %22 = vector.shape_cast %14 : vector<8x16xf32> to vector<1x8x16xf32>
    %23 = tpu.concatenate %15, %16, %17, %18, %19, %20, %21, %22 in 0 : vector<1x8x16xf32>, vector<1x8x16xf32>, vector<1x8x16xf32>, vector<1x8x16xf32>, vector<1x8x16xf32>, vector<1x8x16xf32>, vector<1x8x16xf32>, vector<1x8x16xf32> -> vector<8x8x16xf32>
    %24 = arith.truncf %23 : vector<8x8x16xf32> to vector<8x8x16xbf16>
    %c0_5 = arith.constant 0 : index
    %c0_6 = arith.constant 0 : index
    %c0_7 = arith.constant 0 : index
    %25 = vector.load %arg12[%c0_5, %c0_6, %c0_7] : memref<8x16x16xbf16, #tpu.memory_space<vmem>>, vector<8x16x16xbf16>
    "tpu.trace_start"() <{level = 10 : i32, message = "hqd,hkd->hqk"}> : () -> ()
    %cst_8 = arith.constant dense<0.000000e+00> : vector<8x8x16xf32>
    %26 = tpu.matmul %24, %25, %cst_8 {dimension_numbers = #tpu.dot_dimension_numbers<[2], [2], [1], [1], [0, 0, 0, 1, 1, 1], [0], [0]>} : vector<8x8x16xbf16>, vector<8x16x16xbf16>, vector<8x8x16xf32> -> vector<8x8x16xf32>
    "tpu.trace_stop"() : () -> ()
    %cst_9 = arith.constant dense<0.000000e+00> : vector<8x8xf32>
    %27 = vector.multi_reduction <add>, %26, %cst_9 [2] : vector<8x8x16xf32> to vector<8x8xf32>
    %28 = vector.shape_cast %27 : vector<8x8xf32> to vector<8x8x1xf32>
    %29 = arith.mulf %26, %26 : vector<8x8x16xf32>
    %cst_10 = arith.constant dense<0.000000e+00> : vector<8x8xf32>
    %30 = vector.multi_reduction <add>, %29, %cst_10 [2] : vector<8x8x16xf32> to vector<8x8xf32>
    %31 = vector.shape_cast %30 : vector<8x8xf32> to vector<8x8x1xf32>
    %cst_11 = arith.constant 6.250000e-02 : f32
    %32 = vector.broadcast %cst_11 : f32 to vector<8x8x1xf32>
    %33 = arith.mulf %28, %32 : vector<8x8x1xf32>
    %cst_12 = arith.constant 6.250000e-02 : f32
    %34 = vector.broadcast %cst_12 : f32 to vector<8x8x1xf32>
    %35 = arith.mulf %31, %34 : vector<8x8x1xf32>
    %36 = arith.mulf %33, %33 : vector<8x8x1xf32>
    %37 = arith.subf %35, %36 : vector<8x8x1xf32>
    %cst_13 = arith.constant 9.99999993E-9 : f32
    %38 = vector.broadcast %cst_13 : f32 to vector<8x8x1xf32>
    %39 = arith.addf %37, %38 : vector<8x8x1xf32>
    %40 = math.rsqrt %39 : vector<8x8x1xf32>
    %41 = vector.broadcast %33 : vector<8x8x1xf32> to vector<8x8x16xf32>
    %42 = arith.subf %26, %41 : vector<8x8x16xf32>
    %43 = vector.broadcast %40 : vector<8x8x1xf32> to vector<8x8x16xf32>
    %44 = arith.mulf %42, %43 : vector<8x8x16xf32>
    %45 = arith.truncf %44 : vector<8x8x16xf32> to vector<8x8x16xbf16>
    %c0_14 = arith.constant 0 : index
    %c0_15 = arith.constant 0 : index
    %c0_16 = arith.constant 0 : index
    %46 = vector.load %arg13[%c0_14, %c0_15, %c0_16] : memref<8x16x16xbf16, #tpu.memory_space<vmem>>, vector<8x16x16xbf16>
    "tpu.trace_start"() <{level = 10 : i32, message = "hqk,hkd->hqd"}> : () -> ()
    %cst_17 = arith.constant dense<0.000000e+00> : vector<8x8x16xf32>
    %47 = tpu.matmul %45, %46, %cst_17 {dimension_numbers = #tpu.dot_dimension_numbers<[2], [1], [1], [2], [0, 0, 0, 1, 1, 2], [0], [0]>} : vector<8x8x16xbf16>, vector<8x16x16xbf16>, vector<8x8x16xf32> -> vector<8x8x16xf32>
    "tpu.trace_stop"() : () -> ()
    %c0_18 = arith.constant 0 : index
    %c0_19 = arith.constant 0 : index
    %c0_20 = arith.constant 0 : index
    %48 = vector.load %arg14[%c0_18, %c0_19, %c0_20] : memref<8x1x16xf32, #tpu.memory_space<vmem>>, vector<8x1x16xf32>
    %49 = vector.broadcast %48 : vector<8x1x16xf32> to vector<8x8x16xf32>
    %50 = arith.addf %47, %49 : vector<8x8x16xf32>
    %51 = vector.extract_strided_slice %50 {offsets = [0, 0, 0], sizes = [1, 8, 16], strides = [1, 1, 1]} : vector<8x8x16xf32> to vector<1x8x16xf32>
    %52 = vector.shape_cast %51 : vector<1x8x16xf32> to vector<8x16xf32>
    %c0_21 = arith.constant 0 : index
    %c0_22 = arith.constant 0 : index
    %53 = vector.load %arg15[%c0_21, %c0_22] : memref<8x128xf32, #tpu.memory_space<vmem>>, vector<8x16xf32>
    tpu.vector_store %arg15[%c0_21, %c0_22], %52 {strides = array<i32>} : memref<8x128xf32, #tpu.memory_space<vmem>>, vector<8x16xf32>,
    %54 = vector.extract_strided_slice %50 {offsets = [1, 0, 0], sizes = [1, 8, 16], strides = [1, 1, 1]} : vector<8x8x16xf32> to vector<1x8x16xf32>
    %55 = vector.shape_cast %54 : vector<1x8x16xf32> to vector<8x16xf32>
    %c0_23 = arith.constant 0 : index
    %c16 = arith.constant 16 : index
    %56 = vector.load %arg15[%c0_23, %c16] : memref<8x128xf32, #tpu.memory_space<vmem>>, vector<8x16xf32>
    tpu.vector_store %arg15[%c0_23, %c16], %55 {strides = array<i32>} : memref<8x128xf32, #tpu.memory_space<vmem>>, vector<8x16xf32>,
    %57 = vector.extract_strided_slice %50 {offsets = [2, 0, 0], sizes = [1, 8, 16], strides = [1, 1, 1]} : vector<8x8x16xf32> to vector<1x8x16xf32>
    %58 = vector.shape_cast %57 : vector<1x8x16xf32> to vector<8x16xf32>
    %c0_24 = arith.constant 0 : index
    %c32 = arith.constant 32 : index
    %59 = vector.load %arg15[%c0_24, %c32] : memref<8x128xf32, #tpu.memory_space<vmem>>, vector<8x16xf32>
    tpu.vector_store %arg15[%c0_24, %c32], %58 {strides = array<i32>} : memref<8x128xf32, #tpu.memory_space<vmem>>, vector<8x16xf32>,
    %60 = vector.extract_strided_slice %50 {offsets = [3, 0, 0], sizes = [1, 8, 16], strides = [1, 1, 1]} : vector<8x8x16xf32> to vector<1x8x16xf32>
    %61 = vector.shape_cast %60 : vector<1x8x16xf32> to vector<8x16xf32>
    %c0_25 = arith.constant 0 : index
    %c48 = arith.constant 48 : index
    %62 = vector.load %arg15[%c0_25, %c48] : memref<8x128xf32, #tpu.memory_space<vmem>>, vector<8x16xf32>
    tpu.vector_store %arg15[%c0_25, %c48], %61 {strides = array<i32>} : memref<8x128xf32, #tpu.memory_space<vmem>>, vector<8x16xf32>,
    %63 = vector.extract_strided_slice %50 {offsets = [4, 0, 0], sizes = [1, 8, 16], strides = [1, 1, 1]} : vector<8x8x16xf32> to vector<1x8x16xf32>
    %64 = vector.shape_cast %63 : vector<1x8x16xf32> to vector<8x16xf32>
    %c0_26 = arith.constant 0 : index
    %c64 = arith.constant 64 : index
    %65 = vector.load %arg15[%c0_26, %c64] : memref<8x128xf32, #tpu.memory_space<vmem>>, vector<8x16xf32>
    tpu.vector_store %arg15[%c0_26, %c64], %64 {strides = array<i32>} : memref<8x128xf32, #tpu.memory_space<vmem>>, vector<8x16xf32>,
    %66 = vector.extract_strided_slice %50 {offsets = [5, 0, 0], sizes = [1, 8, 16], strides = [1, 1, 1]} : vector<8x8x16xf32> to vector<1x8x16xf32>
    %67 = vector.shape_cast %66 : vector<1x8x16xf32> to vector<8x16xf32>
    %c0_27 = arith.constant 0 : index
    %c80 = arith.constant 80 : index
    %68 = vector.load %arg15[%c0_27, %c80] : memref<8x128xf32, #tpu.memory_space<vmem>>, vector<8x16xf32>
    tpu.vector_store %arg15[%c0_27, %c80], %67 {strides = array<i32>} : memref<8x128xf32, #tpu.memory_space<vmem>>, vector<8x16xf32>,
    %69 = vector.extract_strided_slice %50 {offsets = [6, 0, 0], sizes = [1, 8, 16], strides = [1, 1, 1]} : vector<8x8x16xf32> to vector<1x8x16xf32>
    %70 = vector.shape_cast %69 : vector<1x8x16xf32> to vector<8x16xf32>
    %c0_28 = arith.constant 0 : index
    %c96 = arith.constant 96 : index
    %71 = vector.load %arg15[%c0_28, %c96] : memref<8x128xf32, #tpu.memory_space<vmem>>, vector<8x16xf32>
    tpu.vector_store %arg15[%c0_28, %c96], %70 {strides = array<i32>} : memref<8x128xf32, #tpu.memory_space<vmem>>, vector<8x16xf32>,
    %72 = vector.extract_strided_slice %50 {offsets = [7, 0, 0], sizes = [1, 8, 16], strides = [1, 1, 1]} : vector<8x8x16xf32> to vector<1x8x16xf32>
    %73 = vector.shape_cast %72 : vector<1x8x16xf32> to vector<8x16xf32>
    %c0_29 = arith.constant 0 : index
    %c112 = arith.constant 112 : index
    %74 = vector.load %arg15[%c0_29, %c112] : memref<8x128xf32, #tpu.memory_space<vmem>>, vector<8x16xf32>
    tpu.vector_store %arg15[%c0_29, %c112], %73 {strides = array<i32>} : memref<8x128xf32, #tpu.memory_space<vmem>>, vector<8x16xf32>,
    %c0_30 = arith.constant 0 : index
    %c0_31 = arith.constant 0 : index
    %75 = vector.load %arg15[%c0_30, %c0_31] : memref<8x128xf32, #tpu.memory_space<vmem>>, vector<8x128xf32>
    %76 = arith.truncf %75 : vector<8x128xf32> to vector<8x128xbf16>
    %c0_32 = arith.constant 0 : index
    %c0_33 = arith.constant 0 : index
    %77 = vector.load %arg7[%c0_32, %c0_33] : memref<128x128xbf16, #tpu.memory_space<vmem>>, vector<128x128xbf16>
    %cst_34 = arith.constant dense<0.000000e+00> : vector<8x128xf32>
    %78 = tpu.matmul %76, %77, %cst_34 {dimension_numbers = #tpu.dot_dimension_numbers<[1], [0], [0], [1], [0, 0, 1, 1], [], []>} : vector<8x128xbf16>, vector<128x128xbf16>, vector<8x128xf32> -> vector<8x128xf32>
    %c0_35 = arith.constant 0 : index
    %c0_36 = arith.constant 0 : index
    %79 = vector.load %arg8[%c0_35, %c0_36] : memref<1x128xf32, #tpu.memory_space<vmem>>, vector<1x128xf32>
    %80 = vector.broadcast %79 : vector<1x128xf32> to vector<8x128xf32>
    %81 = arith.addf %78, %80 : vector<8x128xf32>
    %c0_37 = arith.constant 0 : index
    %c0_38 = arith.constant 0 : index
    %c0_39 = arith.constant 0 : index
    %82 = vector.load %arg11[%c0_37, %c0_38, %c0_39] : memref<1x8x128xf32, #tpu.memory_space<vmem>>, vector<1x8x128xf32>
    %83 = vector.shape_cast %82 : vector<1x8x128xf32> to vector<8x128xf32>
    %84 = vector.shape_cast %81 : vector<8x128xf32> to vector<1x8x128xf32>
    tpu.vector_store %arg11[%c0_37, %c0_38, %c0_39], %84 {strides = array<i32>} : memref<1x8x128xf32, #tpu.memory_space<vmem>>, vector<1x8x128xf32>,
    return
  }
  func.func @transform_0(%arg0: i32, %arg1: i32) -> (i32, i32, i32) {
    %c0_i32 = arith.constant 0 : i32
    %c0_i32_0 = arith.constant 0 : i32
    return %arg0, %arg1, %c0_i32 : i32, i32, i32
  }
  func.func @transform_1(%arg0: i32, %arg1: i32) -> (i32, i32, i32) {
    %c0_i32 = arith.constant 0 : i32
    %c0_i32_0 = arith.constant 0 : i32
    %c0_i32_1 = arith.constant 0 : i32
    return %arg0, %c0_i32, %c0_i32_0 : i32, i32, i32
  }
  func.func @transform_2(%arg0: i32, %arg1: i32) -> (i32, i32) {
    %c0_i32 = arith.constant 0 : i32
    %c0_i32_0 = arith.constant 0 : i32
    %c0_i32_1 = arith.constant 0 : i32
    return %c0_i32, %c0_i32_0 : i32, i32
  }
  func.func @transform_3(%arg0: i32, %arg1: i32) -> (i32, i32) {
    %c0_i32 = arith.constant 0 : i32
    %c0_i32_0 = arith.constant 0 : i32
    %c0_i32_1 = arith.constant 0 : i32
    return %c0_i32, %c0_i32_0 : i32, i32
  }
  func.func @transform_4(%arg0: i32, %arg1: i32) -> (i32, i32) {
    %c0_i32 = arith.constant 0 : i32
    %c0_i32_0 = arith.constant 0 : i32
    %c0_i32_1 = arith.constant 0 : i32
    return %c0_i32, %c0_i32_0 : i32, i32
  }
  func.func @transform_5(%arg0: i32, %arg1: i32) -> (i32, i32) {
    %c0_i32 = arith.constant 0 : i32
    %c0_i32_0 = arith.constant 0 : i32
    %c0_i32_1 = arith.constant 0 : i32
    return %c0_i32, %c0_i32_0 : i32, i32
  }
  func.func @transform_6(%arg0: i32, %arg1: i32) -> (i32, i32) {
    %c0_i32 = arith.constant 0 : i32
    %c0_i32_0 = arith.constant 0 : i32
    %c0_i32_1 = arith.constant 0 : i32
    return %c0_i32, %c0_i32_0 : i32, i32
  }
  func.func @transform_7(%arg0: i32, %arg1: i32) -> i32 {
    %c0_i32 = arith.constant 0 : i32
    %c0_i32_0 = arith.constant 0 : i32
    return %c0_i32 : i32
  }
  func.func @transform_8(%arg0: i32, %arg1: i32) -> i32 {
    %c0_i32 = arith.constant 0 : i32
    %c0_i32_0 = arith.constant 0 : i32
    return %c0_i32 : i32
  }
  func.func @transform_9(%arg0: i32, %arg1: i32) -> (i32, i32, i32) {
    %c0_i32 = arith.constant 0 : i32
    %c0_i32_0 = arith.constant 0 : i32
    return %arg0, %arg1, %c0_i32 : i32, i32, i32
  }
}

</mosaic_0001>

<bundles_post_ra>
// kernel: tpu_custom_call.1
= control target key start
LH: loop header
LB: loop body
LE: loop exit
PB: predicated region body
PF: predicated region fallthrough
CT: control target
= control target key end

     0   :  { %s4261_s0 = inlined_call_operand.hbm [shape: bf16[2,16,128], index: 0, kind: input, shape index: {}]   ;;  %s4262_s1 = inlined_call_operand.hbm [shape: bf16[2,16,128], index: 1, kind: input, shape index: {}]   ;;  %s4263_s2 = inlined_call_operand.hbm [shape: bf16[128,128], index: 2, kind: input, shape index: {}]   ;;  %s4264_s3 = inlined_call_operand.hbm [shape: bf16[128,128], index: 3, kind: input, shape index: {}]   ;;  %s4265_s4 = inlined_call_operand.hbm [shape: bf16[128,128], index: 4, kind: input, shape index: {}]   ;;  %s4266_s5 = inlined_call_operand.hbm [shape: bf16[128,128], index: 5, kind: input, shape index: {}]   ;;  %s4267_s6 = inlined_call_operand.vmem [shape: f32[1,128], index: 6, kind: input, shape index: {}]   ;;  %s4268_s7 = inlined_call_operand.vmem [shape: f32[8], index: 7, kind: input, shape index: {}]   ;;  %s4269_s8 = inlined_call_operand.vmem [shape: f32[8], index: 8, kind: input, shape index: {}]   ;;  %s4270_s9 = inlined_call_operand.hbm [shape: f32[2,16,128], index: 9, kind: output, shape index: {}]  }
   0x1   :  { %4284 = sst [smem:[#allocation35_spill]] %s4261_s0 }
   0x2   :  { %4285 = sst [smem:[#allocation36_spill]] %s4262_s1 }
   0x3   :  { %4286 = sst [smem:[#allocation37_spill]] %s4263_s2 }
   0x4   :  { %4287 = sst [smem:[#allocation38_spill]] %s4264_s3 }
   0x5   :  { %4288 = sst [smem:[#allocation39_spill]] %s4265_s4 }
   0x6   :  { %4289 = sst [smem:[#allocation40_spill]] %s4266_s5 }
   0x7   :  { %4290 = sst [smem:[#allocation41_spill]] %s4267_s6 }
   0x8   :  { %4291 = sst [smem:[#allocation42_spill]] %s4268_s7 }
   0x9   :  { %4292 = sst [smem:[#allocation43_spill]] %s4269_s8 }
   0xa   :  { %4293 = sst [smem:[#allocation44_spill]] %s4270_s9 }
   0xb   :  { %14 = vsyncpa [#allocation7], 0 }
   0xc   :  { %16 = vsyncpa [#allocation7 + $0x1], 0 }
   0xd   :  { %17 = vsyncpa [#allocation11], 0 }
   0xe   :  { %19 = vsyncpa [#allocation11 + $0x1], 0 }
   0xf   :  { %20 = vsyncpa [#allocation14], 0 }
  0x10   :  { %21 = vsyncpa [#allocation17], 0 }
  0x11   :  { %22 = vsyncpa [#allocation9], 0 }
  0x12   :  { %23 = vsyncpa [#allocation20], 0 }
  0x13   :  { %24 = vsyncpa [#allocation8], 0 }
  0x14   :  { %26 = vsyncpa [#allocation8 + $0x1], 0  ;;  %s3387_s30 = smov 0   ;;  %s3389_s10 = smov 0  }
  0x15   :  { %s3391_s11 = smov 0   ;;  %s3393_s12 = smov 0  }
  0x16   :  { %s3395_s13 = smov 0   ;;  %s3397_s14 = smov 0  }
  0x17   :  { %s3399_s15 = smov 0   ;;  %s3401_s16 = smov 0  }
  0x18   :  { %s3403_s17 = smov 0   ;;  %s3405_s18 = smov 0  }
  0x19   :  { %s3407_s19 = smov 0  }
  0x1a LB: > { %4294 = sst [smem:[#allocation30_spill]] %s3266_s30  ;;  %s3443_s20 = sadd.s32 4294967295, %s3306_s19   ;;  %s3306_s19 = sphi %s3407_s19, %s32_s19   ;;  %s3302_s18 = sphi %s3405_s18, %s4356_s18   ;;  %s3298_s17 = sphi %s3403_s17, %s4355_s17   ;;  %s3294_s16 = sphi %s3401_s16, %s4354_s16   ;;  %s3290_s15 = sphi %s3399_s15, %s4353_s15   ;;  %s3286_s14 = sphi %s3397_s14, %s4352_s14   ;;  %s3282_s13 = sphi %s3395_s13, %s4351_s13   ;;  %s3278_s12 = sphi %s3393_s12, %s4350_s12   ;;  %s3274_s11 = sphi %s3391_s11, %s4349_s11   ;;  %s3270_s10 = sphi %s3389_s10, %s4348_s10   ;;  %s3266_s30 = sphi %s3387_s30, %s4347_s30  }
  0x1b   : > { %4295 = sst [smem:[#allocation31_spill]] %s3290_s15  ;;  %p2374_p0 = scmp.ge.s32.totalorder %s3306_s19, 1 }
  0x1c   : > { %4296 = sst [smem:[#allocation32_spill]] %s3294_s16  ;;  %p4275_p1 = scmp.eq.s32.totalorder %s3443_s20, 0 }
  0x1d   : > { %p278_p2 = scmp.lt.s32.totalorder %s3306_s19, 5  ;;  %s3308_s22 = smov [#allocation12]  }
  0x1e   : > { %s290_s23 = sshll.u32 %s3308_s22, 4  ;;  %s3309_s25 = smov [#allocation13]   ;;  %s3452_s23 = int_to_ptr.vmem [resolvable:$true] %s290_s23 }
  0x1f   : > { %p3448_p3 = pnand %p2374_p0, %p278_p2  ;;  %s303_s26 = sshll.u32 %s3309_s25, 4  ;;  %s3462_s26 = int_to_ptr.vmem [resolvable:$true] %s303_s26 }
  0x20   : > { %s3310_s27 = smov [#allocation15]   ;;  %s4300_s2 = sld [smem:[#allocation37_spill]] }
  0x21   : > { %s4297_s21 = scalar_select %p3448_p3, 1, 0 }
  0x22   : > { %p2751_p4 = pneg %p3448_p3  ;;  %s3464_s28 = sshll.u32 %s3310_s27, 4  ;;  %s317_s28 = int_to_ptr.vmem [resolvable:$true] %s3464_s28 }
  0x23   : > { %4298 = sst [smem:[#allocation33_spill]] %s4297_s21 }
  0x24   : > { %p3458_p5 = pnand %p2751_p4, %p4275_p1 }
  0x26   : > { %s2958_s22 = scalar_lea.hbm %s4300_s2, 1024  ;;  %p3474_p7 = pneg %p3458_p5 }
  0x27   : > { %p2959_p6 = scmp.ne.s32.totalorder %s4300_s2, %s2958_s22  ;;  %p2965_p10 = scmp.lt.u32.totalorder %s2958_s22, %s4300_s2 }
  0x29   : > { %p2961_p8 = pnand %p3474_p7, %p2959_p6 }
  0x2b   : > { %p2962_p9 = pneg %p2961_p8 }
  0x2d   : > { %p2967_p11 = pnand %p2965_p10, %p2962_p9 }
  0x2f   : > { %2970 = shalt.err (!%p2967_p11)
}
  0x30   : > { %s2971_s6 = scalar_lea.vmem %s3452_s23, 1024  ;;  %p2979_p2 = scmp.lt.s32.totalorder %s3452_s23, %s3452_s23 }
  0x31   : > { %p2972_p12 = scmp.ne.s32.totalorder %s3452_s23, %s2971_s6  ;;  %p2980_p4 = scmp.lt.s32.totalorder %s2971_s6, %s2971_s6 }
  0x33   : > { %p2974_p13 = pnand %p2972_p12, %p3474_p7  ;;  %p2981_p6 = por %p2980_p4, %p2979_p2 }
  0x35   : > { %p2975_p0 = pneg %p2974_p13 }
  0x37   : > { %p2982_p8 = pnand %p2981_p6, %p2975_p0 }
  0x39   : > { %2985 = shalt.err (!%p2982_p8)
}
  0x3a   : > { %s4277_s9 = smov 64   ;;  %s4278_s16 = smov 4  }
  0x3b   : > { %2754 = dma.hbm_to_vmem [thread:$0]  (!%p3458_p5), %s4300_s2, 1024, %s3452_s23, [#allocation11], %s4277_s9, %s4277_s9, %s4278_s16  }
  0x3c   : > { %s4302_s3 = sld [smem:[#allocation38_spill]] }
  0x42   : > { %s2986_s6 = scalar_lea.hbm %s4302_s3, 1024 }
  0x43   : > { %p2987_p9 = scmp.ne.s32.totalorder %s4302_s3, %s2986_s6  ;;  %p2993_p12 = scmp.lt.u32.totalorder %s2986_s6, %s4302_s3 }
  0x45   : > { %p2989_p10 = pnand %p2987_p9, %p3474_p7 }
  0x47   : > { %p2990_p11 = pneg %p2989_p10 }
  0x49   : > { %p2995_p13 = pnand %p2993_p12, %p2990_p11 }
  0x4b   : > { %2998 = shalt.err (!%p2995_p13)
}
  0x4c   : > { %s2999_s23 = scalar_lea.vmem %s3462_s26, 1024  ;;  %p3007_p6 = scmp.lt.s32.totalorder %s3462_s26, %s3462_s26 }
  0x4d   : > { %p3000_p0 = scmp.ne.s32.totalorder %s3462_s26, %s2999_s23  ;;  %p3008_p8 = scmp.lt.s32.totalorder %s2999_s23, %s2999_s23 }
  0x4f   : > { %p3002_p2 = pnand %p3000_p0, %p3474_p7  ;;  %p3009_p9 = por %p3008_p8, %p3007_p6 }
  0x51   : > { %p3003_p4 = pneg %p3002_p2 }
  0x53   : > { %p3010_p10 = pnand %p3009_p9, %p3003_p4 }
  0x55   : > { %3013 = shalt.err (!%p3010_p10)
}
  0x56   : > { %2757 = dma.hbm_to_vmem [thread:$0]  (!%p3458_p5), %s4302_s3, 1024, %s3462_s26, [#allocation14], %s4277_s9, %s4277_s9, %s4278_s16  }
  0x57   : > { %s4303_s4 = sld [smem:[#allocation39_spill]] }
  0x5d   : > { %s3014_s29 = scalar_lea.hbm %s4303_s4, 1024 }
  0x5e   : > { %p3015_p11 = scmp.ne.s32.totalorder %s4303_s4, %s3014_s29  ;;  %p3021_p0 = scmp.lt.u32.totalorder %s3014_s29, %s4303_s4 }
  0x60   : > { %p3017_p12 = pnand %p3015_p11, %p3474_p7 }
  0x62   : > { %p3018_p13 = pneg %p3017_p12 }
  0x64   : > { %p3023_p2 = pnand %p3021_p0, %p3018_p13 }
  0x66   : > { %3026 = shalt.err (!%p3023_p2)
}
  0x67   : > { %s3027_s23 = scalar_lea.vmem %s317_s28, 1024  ;;  %p3035_p9 = scmp.lt.s32.totalorder %s317_s28, %s317_s28 }
  0x68   : > { %p3028_p4 = scmp.ne.s32.totalorder %s317_s28, %s3027_s23  ;;  %p3036_p10 = scmp.lt.s32.totalorder %s3027_s23, %s3027_s23 }
  0x6a   : > { %p3030_p6 = pnand %p3028_p4, %p3474_p7  ;;  %p3037_p1 = por %p3036_p10, %p3035_p9 }
  0x6c   : > { %p3031_p8 = pneg %p3030_p6 }
  0x6e   : > { %p3038_p3 = pnand %p3037_p1, %p3031_p8 }
  0x70   : > { %3041 = shalt.err (!%p3038_p3)
}
  0x71   : > { %2760 = dma.hbm_to_vmem [thread:$0]  (!%p3458_p5), %s4303_s4, 1024, %s317_s28, [#allocation14], %s4277_s9, %s4277_s9, %s4278_s16  }
  0x72   : > { %s3313_s1 = smov [#allocation16]   ;;  %s4304_s7 = sld [smem:[#allocation42_spill]] }
  0x73   : > { %s329_s30 = sshll.u32 %s3313_s1, 4  ;;  %s4305_s5 = sld [smem:[#allocation40_spill]]  ;;  %s330_s30 = int_to_ptr.vmem [resolvable:$true] %s329_s30 }
  0x78   : > { %s346_s22 = sshll.u32 %s4304_s7, 4  ;;  %s3549_s22 = int_to_ptr.vmem [resolvable:$true] %s346_s22 }
  0x79   : > { %s3042_s6 = scalar_lea.hbm %s4305_s5, 1024 }
  0x7a   : > { %p3043_p1 = scmp.ne.s32.totalorder %s4305_s5, %s3042_s6  ;;  %p3049_p12 = scmp.lt.u32.totalorder %s3042_s6, %s4305_s5 }
  0x7c   : > { %p3045_p3 = pnand %p3043_p1, %p3474_p7 }
  0x7e   : > { %p3046_p11 = pneg %p3045_p3 }
  0x80   : > { %p3051_p13 = pnand %p3049_p12, %p3046_p11 }
  0x82   : > { %3054 = shalt.err (!%p3051_p13)
}
  0x83   : > { %s3055_s0 = scalar_lea.vmem %s330_s30, 1024  ;;  %p3063_p6 = scmp.lt.s32.totalorder %s330_s30, %s330_s30 }
  0x84   : > { %p3056_p0 = scmp.ne.s32.totalorder %s330_s30, %s3055_s0  ;;  %p3064_p8 = scmp.lt.s32.totalorder %s3055_s0, %s3055_s0 }
  0x86   : > { %p3058_p2 = pnand %p3056_p0, %p3474_p7  ;;  %p3065_p9 = por %p3064_p8, %p3063_p6 }
  0x88   : > { %p3059_p4 = pneg %p3058_p2 }
  0x8a   : > { %p3066_p10 = pnand %p3065_p9, %p3059_p4 }
  0x8c   : > { %3069 = shalt.err (!%p3066_p10)
}
  0x8d   : > { %2763 = dma.hbm_to_vmem [thread:$0]  (!%p3458_p5), %s4305_s5, 1024, %s330_s30, [#allocation17], %s4277_s9, %s4277_s9, %s4278_s16  }
  0x8e   : > { %s4306_s8 = sld [smem:[#allocation43_spill]]  ;;  %s3070_s27 = scalar_lea.vmem %s3549_s22, 16 }
  0x8f   : > { %p3071_p1 = scmp.ne.s32.totalorder %s3549_s22, %s3070_s27  ;;  %p3078_p12 = scmp.lt.s32.totalorder %s3549_s22, %s3549_s22 }
  0x90   : > { %p3079_p13 = scmp.lt.s32.totalorder %s3070_s27, %s3070_s27 }
  0x91   : > { %p3073_p3 = pnand %p3071_p1, %p3474_p7 }
  0x92   : > { %p3080_p0 = por %p3079_p13, %p3078_p12 }
  0x93   : > { %p3074_p11 = pneg %p3073_p3 }
  0x94   : > { %s357_s25 = sshll.u32 %s4306_s8, 4  ;;  %s358_s25 = int_to_ptr.vmem [resolvable:$true] %s357_s25 }
  0x95   : > { %p3081_p2 = pnand %p3080_p0, %p3074_p11 }
  0x97   : > { %3084 = shalt.err (!%p3081_p2)
}
  0x98   : > { %s3314_s6 = smov [#allocation18]   ;;  %s3085_s30 = scalar_lea.vmem %s358_s25, 16 }
  0x99   : > { %2766 = dma.vmem_to_smem (!%p3458_p5), %s3549_s22, 16, %s3314_s6, [#allocation9]  }
  0x9a   : > { %p3086_p4 = scmp.ne.s32.totalorder %s358_s25, %s3085_s30  ;;  %p3093_p9 = scmp.lt.s32.totalorder %s358_s25, %s358_s25 }
  0x9b   : > { %p3094_p10 = scmp.lt.s32.totalorder %s3085_s30, %s3085_s30 }
  0x9c   : > { %p3088_p6 = pnand %p3086_p4, %p3474_p7 }
  0x9d   : > { %p3095_p1 = por %p3094_p10, %p3093_p9 }
  0x9e   : > { %p3089_p8 = pneg %p3088_p6 }
  0xa0   : > { %p3096_p3 = pnand %p3095_p1, %p3089_p8 }
  0xa2   : > { %3099 = shalt.err (!%p3096_p3)
}
  0xa3   : > { %s3315_s23 = smov [#allocation19]   ;;  %s2373_s15 = sadd.s32 4294967294, %s3306_s19  }
  0xa4   : > { %2769 = dma.vmem_to_smem (!%p3458_p5), %s358_s25, 16, %s3315_s23, [#allocation20]  }
  0xa5   : > { %s41_s24 = sadd.s32 1, %s3298_s17  ;;  %s4307_s22 = sld [smem:[#allocation30_spill]] }
  0xa6   : > { %p42_p7 = scmp.ge.s32.totalorder %s41_s24, 2  ;;  %s44_s28 = sadd.s32 1, %s3302_s18 }
  0xa7   : > { %s53_s26 = sadd.s32 1, %s3286_s14  ;;  %p60_p11 = scmp.ne.s32.totalorder %s3286_s14, %s3282_s13 }
  0xa8   : > { %s4358_s24 = smov (%p42_p7, %s41_s24), 0  ;;  %s4360_s28 = smov (!%p42_p7, %s44_s28), %s3302_s18 }
  0xa9   : > { %s49_s0 = ssub.s32 %s3298_s17, %s4358_s24  ;;  %p61_p5 = scmp.eq.s32.totalorder %s3306_s19, 0 }
  0xaa   : > { %p46_p12 = scmp.ge.s32.totalorder %s4360_s28, 2  ;;  %p66_p13 = scmp.ne.s32.totalorder %s3282_s13, %s3278_s12 }
  0xab   : > { %p3607_p0 = por %p61_p5, %p60_p11  ;;  %s79_s1 = sadd.s32 1, %s3274_s11 }
  0xac   : > { %s4362_s28 = smov (%p46_p12, %s4360_s28), 0  ;;  %p4310_p2 = scmp.eq.s32.totalorder %s3443_s20, 0 }
  0xad   : > { %4309 = sst [smem:[#allocation34_spill]] %s4362_s28  ;;  %p86_p6 = scmp.ne.s32.totalorder %s3274_s11, %s3270_s10 }
  0xae   : > { %p3619_p4 = por %p4310_p2, %p66_p13  ;;  %s48_s29 = ssub.s32 %s3302_s18, %s4362_s28 }
  0xaf   : > { %p92_p8 = scmp.ne.s32.totalorder %s3270_s10, %s4307_s22  ;;  %s50_s25 = sor.u32 %s49_s0, %s48_s29 }
  0xb0   : > { %s4311_s21 = scalar_select %p3619_p4, 1, 0 }
  0xb1   : > { %p77_p9 = scmp.eq.s32.totalorder %s48_s29, 0  ;;  %p51_p10 = scmp.eq.s32.totalorder %s50_s25, 0 }
  0xb2   : > { %p3631_p1 = por %p86_p6, %p61_p5  ;;  %p4313_p3 = pmov %p4310_p2 }
  0xb3   : > { %s3636_s6 = scalar_select %p77_p9, %s3274_s11, %s79_s1  }
  0xb4   : > { %s3639_s30 = scalar_select %p51_p10, %s3286_s14, %s53_s26  }
  0xb5   : > { %p3643_p7 = por %p92_p8, %p4313_p3  ;;  %p265_p12 = scmp.eq.s32.totalorder %s3443_s20, 3 }
  0xb6   : > { %p271_p2 = scmp.eq.s32.totalorder %s2373_s15, 3  ;;  %p2787_p5 = scmp.lt.s32.totalorder %s3306_s19, 4 }
  0xb7   : > { %s4314_s23 = scalar_select %p3643_p7, 1, 0 }
  0xb8   : > { %p3652_p6 = por %p265_p12, %p60_p11  ;;  %s368_s26 = sand.u32 1, %s3286_s14  }
  0xb9   : > { %p3660_p9 = por %p271_p2, %p66_p13  ;;  %s2382_s1 = sshll.u32 %s368_s26, 2 }
  0xba   : > { %s4315_s22 = scalar_select %p3652_p6, 1, 0 }
  0xbb   : > { %s4316_s0 = scalar_select %p3660_p9, 1, 0 }
  0xbc   : > { %s2383_s29 = sshll.u32 %s3302_s18, 1  ;;  %s372_s16 = scalar_lea.vmem [#allocation6], %s2382_s1 }
  0xbd   : > { %s377_s25 = sadd.s32 %s3298_s17, %s2383_s29  ;;  %s381_s3 = sshll.u32 %s372_s16, 4  ;;  %s3671_s3 = int_to_ptr.vmem [resolvable:$true] %s381_s3 }
  0xbe   : > { %s2384_s9 = sshll.u32 %s377_s25, 6  ;;  %s4317_s5 = sld [smem:[#allocation35_spill]] }
  0xbf   : > { %p3677_p11 = pnand %p2787_p5, %p3607_p0  ;;  %p3685_p13 = pnand %p2787_p5, %p3631_p1 }
  0xc0   : > { %s390_s16 = sand.u32 1, %s3274_s11   ;;  %s369_s1 = scalar_lea.sflag [#allocation7], %s368_s26 }
  0xc1   : > { %p3102_p10 = pneg %p3677_p11 }
  0xc4   : > { %s3669_s7 = scalar_lea.hbm %s4317_s5, %s2384_s9  ;;  %s388_s9 = sand.u32 1, %s3306_s19  }
  0xc5   : > { %s3100_s29 = scalar_lea.hbm %s3669_s7, 64  ;;  %s3105_s25 = scalar_lea.hbm %s4317_s5, 256 }
  0xc6   : > { %p3101_p8 = scmp.ne.s32.totalorder %s3669_s7, %s3100_s29  ;;  %p3106_p1 = scmp.lt.u32.totalorder %s3669_s7, %s4317_s5 }
  0xc7   : > { %p3107_p12 = scmp.lt.u32.totalorder %s3105_s25, %s3100_s29  ;;  %p3109_p5 = scmp.lt.u32.totalorder %s3100_s29, %s3669_s7 }
  0xc8   : > { %p3103_p0 = pnand %p3102_p10, %p3101_p8 }
  0xc9   : > { %p3108_p2 = por %p3107_p12, %p3106_p1 }
  0xca   : > { %p3104_p3 = pneg %p3103_p0 }
  0xcb   : > { %p3110_p9 = por %p3109_p5, %p3108_p2 }
  0xcd   : > { %p3111_p6 = pnand %p3110_p9, %p3104_p3 }
  0xcf   : > { %3114 = shalt.err (!%p3111_p6)
}
  0xd0   : > { %s3115_s26 = scalar_lea.vmem %s3671_s3, 64  ;;  %s3316_s2 = smov [#allocation6]  }
  0xd1   : > { %p3116_p8 = scmp.ne.s32.totalorder %s3671_s3, %s3115_s26  ;;  %s3120_s27 = sshll.u32 %s3316_s2, 4  ;;  %s3121_s27 = int_to_ptr.vmem [resolvable:$false] %s3120_s27 }
  0xd2   : > { %s3122_s28 = scalar_lea.vmem %s3121_s27, 128  ;;  %p3123_p4 = scmp.lt.s32.totalorder %s3671_s3, %s3121_s27 }
  0xd3   : > { %p3118_p0 = pnand %p3116_p8, %p3102_p10  ;;  %p3124_p1 = scmp.lt.s32.totalorder %s3122_s28, %s3115_s26 }
  0xd5   : > { %p3119_p7 = pneg %p3118_p0  ;;  %p3125_p12 = por %p3124_p1, %p3123_p4 }
  0xd7   : > { %p3126_p2 = pnand %p3125_p12, %p3119_p7 }
  0xd9   : > { %3129 = shalt.err (!%p3126_p2)
}
  0xda   : > { %2773 = dma.hbm_to_vmem [thread:$0]  (!%p3677_p11), %s3669_s7, 64, %s3671_s3, %s369_s1  }
  0xdb   : > { %s2385_s29 = sshll.u32 %s390_s16, 3  ;;  %s2476_s25 = sshll.u32 %s3302_s18, 7 }
  0xdc   : > { %s4320_s27 = sld [smem:[#allocation36_spill]]  ;;  %s392_s8 = scalar_lea.vmem [#allocation10], %s2385_s29 }
  0xdd   : > { %s399_s28 = sshll.u32 %s392_s8, 4  ;;  %s3728_s5 = scalar_lea.sflag [#allocation11], %s388_s9  ;;  %s3724_s28 = int_to_ptr.vmem [resolvable:$true] %s399_s28 }
  0xde   : > { %p3132_p7 = pneg %p3685_p13 }
  0xe2   : > { %s3722_s26 = scalar_lea.hbm %s4320_s27, %s2476_s25  ;;  %s3135_s1 = scalar_lea.hbm %s4320_s27, 256 }
  0xe3   : > { %s3130_s3 = scalar_lea.hbm %s3722_s26, 128  ;;  %p3136_p11 = scmp.lt.u32.totalorder %s3722_s26, %s4320_s27 }
  0xe4   : > { %p3131_p4 = scmp.ne.s32.totalorder %s3722_s26, %s3130_s3  ;;  %p3137_p10 = scmp.lt.u32.totalorder %s3135_s1, %s3130_s3 }
  0xe5   : > { %p3139_p5 = scmp.lt.u32.totalorder %s3130_s3, %s3722_s26 }
  0xe6   : > { %p3133_p6 = pnand %p3132_p7, %p3131_p4  ;;  %p3138_p3 = por %p3137_p10, %p3136_p11 }
  0xe8   : > { %p3134_p9 = pneg %p3133_p6  ;;  %p3140_p8 = por %p3139_p5, %p3138_p3 }
  0xea   : > { %p3141_p0 = pnand %p3140_p8, %p3134_p9 }
  0xec   : > { %3144 = shalt.err (!%p3141_p0)
}
  0xed   : > { %s3145_s9 = scalar_lea.vmem %s3724_s28, 128  ;;  %s3317_s15 = smov [#allocation10]  }
  0xee   : > { %p3146_p1 = scmp.ne.s32.totalorder %s3724_s28, %s3145_s9  ;;  %s3150_s2 = sshll.u32 %s3317_s15, 4  ;;  %s3151_s2 = int_to_ptr.vmem [resolvable:$false] %s3150_s2 }
  0xef   : > { %s3152_s8 = scalar_lea.vmem %s3151_s2, 256  ;;  %p3153_p4 = scmp.lt.s32.totalorder %s3724_s28, %s3151_s2 }
  0xf0   : > { %p3148_p12 = pnand %p3146_p1, %p3132_p7  ;;  %p3154_p6 = scmp.lt.s32.totalorder %s3152_s8, %s3145_s9 }
  0xf2   : > { %p3149_p2 = pneg %p3148_p12  ;;  %p3155_p11 = por %p3154_p6, %p3153_p4 }
  0xf4   : > { %p3156_p10 = pnand %p3155_p11, %p3149_p2 }
  0xf6   : > { %3159 = shalt.err (!%p3156_p10)
}
  0xf7   : > { %s4321_s3 = smov 4   ;;  %s4322_s7 = smov 64  }
  0xf8   : > { %2776 = dma.hbm_to_vmem [thread:$0]  (!%p3685_p13), %s3722_s26, 128, %s3724_s28, %s3728_s5, %s4322_s7, %s4322_s7, %s4321_s3  }
  0xf9   : > { %s4323_s16 = sld [smem:[#allocation33_spill]] }
  0xff   : > { %p4324_p7 = scmp.ne.s32.totalorder %s4323_s16, 0 }
 0x100   : > { %s3762_s1 = sand.u32 (!%p4324_p7), 1, %s3282_s13   ;;  %p4325_p9 = scmp.ne.s32.totalorder (!%p4324_p7), %s4311_s21, 0 }
 0x101   : > { %411 = sbr.rel (%p4324_p7) target bundleno = 2057 (0x809), region = 56  ;;  %s2389_s25 = sshll.u32 (!%p4324_p7), %s3762_s1, 2 }
 0x102   : > { %s414_s29 = scalar_lea.sflag (!%p4324_p7), [#allocation7], %s3762_s1  ;;  %s3766_s9 = scalar_lea.vmem (!%p4324_p7), [#allocation6], %s2389_s25 }
 0x108   : > { %3233 = dma.done.wait (%p4325_p9), %s414_s29, 64  }
 0x109   : > { %3235 = vsyncadd (%p4325_p9), %s414_s29, 4294967232  ;;  %s422_s5 = sand.u32 1, %s3443_s20   ;;  %s424_s4 = sand.u32 1, %s3270_s10  }
 0x10a   : > { %s3774_s26 = sshll.u32 %s424_s4, 3  ;;  %s423_s28 = scalar_lea.sflag [#allocation11], %s422_s5 }
 0x10b   : > { %s426_s15 = scalar_lea.vmem [#allocation10], %s3774_s26  ;;  %p4326_p13 = scmp.ne.s32.totalorder %s4314_s23, 0 }
 0x10d   : > { %3237 = dma.done.wait (%p4326_p13), %s423_s28, 128  }
 0x10e   : > { %3239 = vsyncadd (%p4326_p13), %s423_s28, 4294967168  ;;  %p4327_p3 = scmp.eq.s32.totalorder %s3443_s20, 0 }
 0x110   : > { %3241 = dma.done.wait (%p4327_p3), [#allocation11], 1024   ;;  %p4328_p5 = pmov %p4327_p3 }
 0x111   : > { %p4329_p8 = pmov %p4327_p3 }
 0x112   : > { %3243 = vsyncadd (%p4328_p5), [#allocation11], 4294966272 }
 0x113   : > { %3245 = dma.done.wait (%p4329_p8), [#allocation14], 2048   ;;  %p4330_p0 = pmov %p4327_p3 }
 0x115   : > { %3247 = vsyncadd (%p4330_p0), [#allocation14], 4294965248  ;;  %p4331_p1 = pmov %p4330_p0 }
 0x116   : > { %p4332_p12 = pmov %p4330_p0 }
 0x117   : > { %3249 = dma.done.wait (%p4331_p1), [#allocation17], 1024  }
 0x118   : > { %3251 = vsyncadd (%p4332_p12), [#allocation17], 4294966272  ;;  %p4333_p2 = pmov %p4330_p0 }
 0x119   : > { %p4334_p4 = pmov %p4330_p0 }
 0x11a   : > { %3253 = dma.done.wait (%p4333_p2), [#allocation9], 16  }
 0x11b   : > { %3255 = vsyncadd (%p4334_p4), [#allocation9], 4294967280  ;;  %p4335_p6 = pmov %p4330_p0 }
 0x11c   : > { %p4336_p11 = pmov %p4330_p0 }
 0x11d   : > { %3257 = dma.done.wait (%p4335_p6), [#allocation20], 16  }
 0x11e   : > { %3259 = vsyncadd (%p4336_p11), [#allocation20], 4294967280 }
 0x11f   : > { %455 = sfence }
 0x120   : > { %s2397_s21 = sshll.u32 %s3762_s1, 3  ;;  %s4337_s2 = sld [smem:[#allocation31_spill]] }
 0x121   : > { %s3802_s23 = scalar_lea.vmem [#allocation21], %s2397_s21 }
 0x126   : > { %p2398_p10 = scmp.ne.s32.totalorder %s4337_s2, 0 }
 0x127   : > { %v2909_v0 = vld [vmem:[#allocation13] sm:$0xff] (!%p2398_p10)   ;;  %v3318_v1 = vmov (!%p2398_p10), 0.0   ;;  %v2911_v3 = vld [vmem:[#allocation13 + $0x8] sm:$0xff] (!%p2398_p10)   ;;  %vm3319_vm0 = vmmov (!%p2398_p10), 0   ;;  %v2913_v5 = vld [vmem:[#allocation13 + $0x10] sm:$0xff] (!%p2398_p10)   ;;  %s3807_s20 = sld [smem:[#allocation18]] (!%p2398_p10) }
 0x128   : > { %495 = sbr.rel (%p2398_p10) target bundleno = 700 (0x2bc), region = 92  ;;  %2545 = vmatprep.subr.bf16.mxu0 (!%p2398_p10), %v3318_v1  ;;  %2565 = vmatprep.subr.bf16.mxu1 (!%p2398_p10), %v3318_v1  ;;  %v2910_v2 = vld [vmem:[#allocation15] sm:$0xff] (!%p2398_p10)   ;;  %v2912_v4 = vld [vmem:[#allocation15 + $0x8] sm:$0xff] (!%p2398_p10)   ;;  %v2914_v6 = vld [vmem:[#allocation15 + $0x10] sm:$0xff] (!%p2398_p10)   ;;  %s3809_s8 = sld [smem:[#allocation18 + $0x3]] (!%p2398_p10)  ;;  %vm715_vm1 = vcmask (!%p2398_p10), 130048  }
 0x129   : > { %2546 = vmatpush3.bf16.msra.mxu0 (!%p2398_p10), %v2909_v0  ;;  %2561 = vmatprep.mubr.msk.bf16.mxu0 (!%p2398_p10), %vm3319_vm0, %v3318_v1  ;;  %v2915_v7 = vld [vmem:[#allocation13 + $0x18] sm:$0xff] (!%p2398_p10)   ;;  %v2917_v9 = vld [vmem:[#allocation13 + $0x20] sm:$0xff] (!%p2398_p10)   ;;  %v2919_v11 = vld [vmem:[#allocation13 + $0x28] sm:$0xff] (!%p2398_p10)   ;;  %s3811_s3 = sld [smem:[#allocation18 + $0x5]] (!%p2398_p10)  ;;  %s3813_s7 = sld [smem:[#allocation18 + $0x1]] (!%p2398_p10)  ;;  %vm755_vm2 = vcmask (!%p2398_p10), 261248  }
 0x12a   : > { %2566 = vmatpush3.bf16.msra.mxu1 (!%p2398_p10), %v2910_v2  ;;  %2547 = vmatprep.subr.bf16.mxu0 (!%p2398_p10), %v3318_v1  ;;  %v2916_v8 = vld [vmem:[#allocation15 + $0x18] sm:$0xff] (!%p2398_p10)   ;;  %v2918_v10 = vld [vmem:[#allocation15 + $0x20] sm:$0xff] (!%p2398_p10)   ;;  %v2920_v12 = vld [vmem:[#allocation15 + $0x28] sm:$0xff] (!%p2398_p10)   ;;  %s3815_s16 = sld [smem:[#allocation18 + $0x2]] (!%p2398_p10)  ;;  %s3817_s25 = sld [smem:[#allocation18 + $0x4]] (!%p2398_p10)  ;;  %vm790_vm3 = vcmask (!%p2398_p10), 392448  }
 0x12b   : > { %2567 = vmatprep.subr.bf16.mxu1 (!%p2398_p10), %v3318_v1  ;;  %2581 = vmatprep.mubr.msk.bf16.mxu1 (!%p2398_p10), %vm3319_vm0, %v3318_v1  ;;  %v2921_v13 = vld [vmem:[#allocation13 + $0x30] sm:$0xff] (!%p2398_p10)   ;;  %v2923_v15 = vld [vmem:[#allocation13 + $0x38] sm:$0xff] (!%p2398_p10)   ;;  %s3819_s29 = sld [smem:[#allocation18 + $0x6]] (!%p2398_p10)  ;;  %s3821_s5 = sld [smem:[#allocation18 + $0x7]] (!%p2398_p10)  ;;  %vm860_vm4 = vcmask (!%p2398_p10), 654848   ;;  %vm930_vm5 = vcmask (!%p2398_p10), 917248  }
 0x12c   : > { %v2922_v14 = vld [vmem:[#allocation15 + $0x30] sm:$0xff] (!%p2398_p10)   ;;  %v2924_v16 = vld [vmem:[#allocation15 + $0x38] sm:$0xff] (!%p2398_p10)   ;;  %vm825_vm6 = vcmask (!%p2398_p10), 523648   ;;  %vm895_vm7 = vcmask (!%p2398_p10), 786048   ;;  %vm965_vm8 = vcmask (!%p2398_p10), 1048448   ;;  %s3320_s4 = smov (!%p2398_p10), 96  }
 0x12d   : > { %2548 = vmatpush3.bf16.msra.mxu0 (!%p2398_p10), %v2911_v3  ;;  %v2925_v17 = vld [vmem:[%s426_s15] sm:$0xff] (!%p2398_p10)   ;;  %v718_v18 = vstv (!%p2398_p10), %s3807_s20  ;;  %s3321_s26 = smov (!%p2398_p10), 112   ;;  %s3322_s28 = smov (!%p2398_p10), 64   ;;  %vm735_vm9 = vcmask (!%p2398_p10), 122880  }
 0x12e   : > { %2568 = vmatpush3.bf16.msra.mxu1 (!%p2398_p10), %v2912_v4  ;;  %2549 = vmatprep.subr.bf16.mxu0 (!%p2398_p10), %v3318_v1  ;;  %v814_v19 = vstv (!%p2398_p10), %s3809_s8  ;;  %s3323_s15 = smov (!%p2398_p10), 80   ;;  %s3916_s21 = sld [smem:[#allocation19 + $0x1]] (!%p2398_p10) }
 0x12f   : > { %2569 = vmatprep.subr.bf16.mxu1 %v3318_v1  ;;  %v884_v20 = vstv %s3811_s3  ;;  %v744_v21 = vstv %s3813_s7  ;;  %s3324_s2 = smov 32   ;;  %s3325_s20 = smov 48  }
 0x130   : > { %v779_v23 = vstv %s3815_s16  ;;  %v849_v26 = vstv %s3817_s25  ;;  %s3932_s8 = sld [smem:[#allocation19 + $0x2]]  ;;  %s3326_s3 = smov 16  }
 0x131   : > { %2550 = vmatpush3.bf16.msra.mxu0 %v2913_v5  ;;  %v919_v27 = vstv %s3819_s29  ;;  %v954_v28 = vstv %s3821_s5  ;;  %s3947_s7 = sld [smem:[#allocation19 + $0x4]]  ;;  %s3961_s16 = sld [smem:[#allocation19]] }
 0x132   : > { %2570 = vmatpush3.bf16.msra.mxu1 %v2914_v6  ;;  %2551 = vmatprep.subr.bf16.mxu0 %v3318_v1  ;;  %s3963_s25 = sld [smem:[#allocation19 + $0x6]]  ;;  %s3965_s29 = sld [smem:[#allocation19 + $0x3]] }
 0x133   : > { %2571 = vmatprep.subr.bf16.mxu1 %v3318_v1  ;;  %s2425_s5 = sld [smem:[#allocation19 + $0x5]] }
 0x135   : > { %2552 = vmatpush3.bf16.msra.mxu0 %v2915_v7 }
 0x136   : > { %2572 = vmatpush3.bf16.msra.mxu1 %v2916_v8  ;;  %2553 = vmatprep.subr.bf16.mxu0 %v3318_v1 }
 0x137   : > { %2573 = vmatprep.subr.bf16.mxu1 %v3318_v1 }
 0x139   : > { %2554 = vmatpush3.bf16.msra.mxu0 %v2917_v9 }
 0x13a   : > { %2574 = vmatpush3.bf16.msra.mxu1 %v2918_v10  ;;  %2555 = vmatprep.subr.bf16.mxu0 %v3318_v1 }
 0x13b   : > { %2575 = vmatprep.subr.bf16.mxu1 %v3318_v1 }
 0x13d   : > { %2556 = vmatpush3.bf16.msra.mxu0 %v2919_v11 }
 0x13e   : > { %2576 = vmatpush3.bf16.msra.mxu1 %v2920_v12  ;;  %2557 = vmatprep.subr.bf16.mxu0 %v3318_v1 }
 0x13f   : > { %2577 = vmatprep.subr.bf16.mxu1 %v3318_v1 }
 0x141   : > { %2558 = vmatpush3.bf16.msra.mxu0 %v2921_v13 }
 0x142   : > { %2578 = vmatpush3.bf16.msra.mxu1 %v2922_v14  ;;  %2559 = vmatprep.subr.bf16.mxu0 %v3318_v1 }
 0x143   : > { %2579 = vmatprep.subr.bf16.mxu1 %v3318_v1 }
 0x145   : > { %2560 = vmatpush3.bf16.msra.mxu0 %v2923_v15 }
 0x146   : > { %2580 = vmatpush3.bf16.msra.mxu1 %v2924_v16 }
 0x148   : > { %2562 = vmatmul.mubr.bf16.vlgmr.msra.gmra.mrb[0].mxu0 %v2925_v17 }
 0x149   : > { %2582 = vmatmul.mubr.bf16.vlgmr.msra.gmra.mrb[0].mxu1 %v2925_v17 }
 0x21b   : > { %v602_v22 = vpop.f32.mrb[0].mxu0 }
 0x21c   : > { %v2563_v24 = vpop.f32.mrb[1].mxu0  ;;  %v3828_v25 = vpop.f32.mrb[0].mxu1 }
 0x21d   : > { %v719_v29 = vmul.f32 %v718_v18, %v3828_v25  ;;  %v605_v30 = vpop.f32.mrb[2].mxu0  ;;  %v2583_v31 = vpop.f32.mrb[1].mxu1  ;;  %v3835_v32 = vmul.f32 %v814_v19, %v3828_v25  ;;  %v3838_v33 = vmul.f32 %v884_v20, %v3828_v25  ;;  %v3841_v34 = vmul.f32 %v744_v21, %v3828_v25 }
 0x21e   : > { %v3843_v35 = vpack.c.bf16 %v605_v30, %v602_v22  ;;  %v2564_v36 = vpop.f32.mrb[3].mxu0  ;;  %v3845_v37 = vpop.f32.mrb[2].mxu1  ;;  %v756_v38 = vsel %vm755_vm2, %v3828_v25, 0.0  ;;  %v3850_v39 = vmul.f32 %v779_v23, %v3828_v25  ;;  %v791_v40 = vsel %vm790_vm3, %v3828_v25, 0.0 }
 0x21f   : > { %v720_v41 = vmul.f32 %v718_v18, %v3845_v37  ;;  %v2584_v42 = vpop.f32.mrb[3].mxu1  ;;  %v3856_v43 = vmul.f32 %v814_v19, %v3845_v37  ;;  %v3859_v44 = vmul.f32 %v884_v20, %v3845_v37  ;;  %v3862_v45 = vmul.f32 %v744_v21, %v3845_v37 }
 0x220   : > { %716 = vst.msk [vmem:[#allocation2] sm:$0xff] %vm715_vm1, %v3843_v35  ;;  %773 = vrot.lane.b32.xlu1 %v3843_v35, %s3320_s4  ;;  %738 = vrot.lane.b32.xlu0 %v3843_v35, %s3321_s26  ;;  %v757_v46 = vsel %vm755_vm2, %v3845_v37, 0.0  ;;  %v3873_v47 = vmul.f32 %v779_v23, %v3845_v37  ;;  %v792_v48 = vsel %vm790_vm3, %v3845_v37, 0.0  ;;  %v3878_v49 = vmul.f32 %v849_v26, %v3828_v25 }
 0x221   : > { %v721_v50 = vpack.c.bf16 %v720_v41, %v719_v29  ;;  %v817_v51 = vpack.c.bf16 %v3856_v43, %v3835_v32  ;;  %v887_v52 = vpack.c.bf16 %v3859_v44, %v3838_v33  ;;  %v747_v53 = vpack.c.bf16 %v3862_v45, %v3841_v34 }
 0x222   : > { %v758_v54 = vadd.f32 %v757_v46, %v756_v38  ;;  %v782_v55 = vpack.c.bf16 %v3873_v47, %v3850_v39  ;;  %v793_v56 = vadd.f32 %v792_v48, %v791_v40  ;;  %v3889_v57 = vmul.f32 %v849_v26, %v3845_v37 }
 0x223   : > { %722 = vst.msk [vmem:[#allocation3] sm:$0xff] %vm715_vm1, %v721_v50  ;;  %v861_v58 = vsel %vm860_vm4, %v3828_v25, 0.0  ;;  %v862_v59 = vsel %vm860_vm4, %v3845_v37, 0.0  ;;  %v3897_v60 = vmul.f32 %v919_v27, %v3828_v25  ;;  %v3900_v61 = vmul.f32 %v919_v27, %v3845_v37 }
 0x224   : > { %843 = vrot.lane.b32.xlu1 %v3843_v35, %s3322_s28  ;;  %808 = vrot.lane.b32.xlu0 %v3843_v35, %s3323_s15  ;;  %v759_v62 = vrot.slane %v758_v54, 4  ;;  %v794_v63 = vrot.slane %v793_v56, 4  ;;  %v852_v0 = vpack.c.bf16 %v3889_v57, %v3878_v49  ;;  %v863_v1 = vadd.f32 %v862_v59, %v861_v58 }
 0x225   : > { %v922_v2 = vpack.c.bf16 %v3900_v61, %v3897_v60  ;;  %v931_v3 = vsel %vm930_vm5, %v3828_v25, 0.0  ;;  %v932_v4 = vsel %vm930_vm5, %v3845_v37, 0.0  ;;  %v826_v5 = vsel %vm825_vm6, %v3828_v25, 0.0 }
 0x226   : > { %v760_v6 = vadd.f32 %v759_v62, %v758_v54  ;;  %v795_v7 = vadd.f32 %v794_v63, %v793_v56  ;;  %v864_v8 = vrot.slane %v863_v1, 4  ;;  %v933_v9 = vadd.f32 %v932_v4, %v931_v3 }
 0x227   : > { %v827_v10 = vsel %vm825_vm6, %v3845_v37, 0.0  ;;  %v3921_v11 = vmul.f32 %v954_v28, %v3828_v25  ;;  %v3924_v12 = vmul.f32 %v954_v28, %v3845_v37  ;;  %v896_v13 = vsel %vm895_vm7, %v3828_v25, 0.0 }
 0x228   : > { %913 = vrot.lane.b32.xlu1 %v3843_v35, %s3324_s2  ;;  %878 = vrot.lane.b32.xlu0 %v3843_v35, %s3325_s20  ;;  %v761_v14 = vrot.slane %v760_v6, 2  ;;  %v796_v15 = vrot.slane %v795_v7, 2  ;;  %v865_v16 = vadd.f32 %v864_v8, %v863_v1  ;;  %v934_v17 = vrot.slane %v933_v9, 4 }
 0x229   : > { %v828_v18 = vadd.f32 %v827_v10, %v826_v5  ;;  %v957_v19 = vpack.c.bf16 %v3924_v12, %v3921_v11  ;;  %v897_v20 = vsel %vm895_vm7, %v3845_v37, 0.0  ;;  %v966_v21 = vsel %vm965_vm8, %v3828_v25, 0.0 }
 0x22a   : > { %v762_v22 = vadd.f32 %v761_v14, %v760_v6  ;;  %v797_v23 = vadd.f32 %v796_v15, %v795_v7  ;;  %v866_v24 = vrot.slane %v865_v16, 2  ;;  %v935_v26 = vadd.f32 %v934_v17, %v933_v9 }
 0x22b   : > { %v829_v27 = vrot.slane %v828_v18, 4  ;;  %v898_v28 = vadd.f32 %v897_v20, %v896_v13  ;;  %v967_v29 = vsel %vm965_vm8, %v3845_v37, 0.0  ;;  %v724_v30 = vsel %vm715_vm1, %v3828_v25, 0.0 }
 0x22c   : > { %819 = vrot.lane.b32.xlu1 %v817_v51, %s3323_s15  ;;  %948 = vrot.lane.b32.xlu0 %v3843_v35, %s3326_s3  ;;  %v763_v31 = vrot.slane %v762_v22, 1  ;;  %v798_v32 = vrot.slane %v797_v23, 1  ;;  %v867_v36 = vadd.f32 %v866_v24, %v865_v16  ;;  %v936_v38 = vrot.slane %v935_v26, 2 }
 0x22d   : > { %v830_v40 = vadd.f32 %v829_v27, %v828_v18  ;;  %v899_v41 = vrot.slane %v898_v28, 4  ;;  %v968_v42 = vadd.f32 %v967_v29, %v966_v21  ;;  %v725_v43 = vsel %vm715_vm1, %v3845_v37, 0.0 }
 0x22e   : > { %v764_v25 = vadd.f32 %v763_v31, %v762_v22  ;;  %v765_v46 = vstv %s3916_s21  ;;  %v726_v54 = vadd.f32 %v725_v43, %v724_v30  ;;  %v800_v35 = vstv %s3932_s8 }
 0x22f   : > { %v831_v48 = vrot.slane %v830_v40, 2  ;;  %v900_v50 = vadd.f32 %v899_v41, %v898_v28  ;;  %v969_v51 = vrot.slane %v968_v42, 4  ;;  %v799_v56 = vadd.f32 %v798_v32, %v797_v23 }
 0x230   : > { %889 = vrot.lane.b32.xlu1 %v887_v52, %s3325_s20  ;;  %749 = vrot.lane.b32.xlu0 %v747_v53, %s3321_s26  ;;  %v868_v37 = vrot.slane %v867_v36, 1  ;;  %v937_v58 = vadd.f32 %v936_v38, %v935_v26  ;;  %v727_v59 = vrot.slane %v726_v54, 4  ;;  %v766_v62 = vmul.f32 %v765_v46, %v764_v25 }
 0x231   : > { %v832_v63 = vadd.f32 %v831_v48, %v830_v40  ;;  %v901_v1 = vrot.slane %v900_v50, 2  ;;  %v970_v3 = vadd.f32 %v969_v51, %v968_v42  ;;  %v801_v34 = vmul.f32 %v800_v35, %v799_v56 }
 0x232   : > { %v728_v33 = vadd.f32 %v727_v59, %v726_v54  ;;  %v869_v44 = vadd.f32 %v868_v37, %v867_v36  ;;  %v870_v45 = vstv %s3947_s7  ;;  %v938_v53 = vrot.slane %v937_v58, 1 }
 0x233   : > { %v833_v4 = vrot.slane %v832_v63, 1  ;;  %v902_v5 = vadd.f32 %v901_v1, %v900_v50  ;;  %v971_v6 = vrot.slane %v970_v3, 2  ;;  %v940_v14 = vstv %s3963_s25 }
 0x234   : > { %768 = vrot.lane.b32.xlu1 %v766_v62, %s3321_s26  ;;  %784 = vrot.lane.b32.xlu0 %v782_v55, %s3320_s4  ;;  %v729_v52 = vrot.slane %v728_v33, 2  ;;  %v871_v39 = vmul.f32 %v870_v45, %v869_v44  ;;  %v733_v55 = vstv %s3961_s16  ;;  %v939_v8 = vadd.f32 %v938_v53, %v937_v58  ;;  %s2429_s26 = sld [smem:[#allocation19 + $0x7]] }
 0x235   : > { %v834_v9 = vadd.f32 %v833_v4, %v832_v63  ;;  %v903_v10 = vrot.slane %v902_v5, 1  ;;  %v972_v13 = vadd.f32 %v971_v6, %v970_v3  ;;  %v835_v15 = vstv %s3965_s29 }
 0x236   : > { %v730_v7 = vadd.f32 %v729_v52, %v728_v33  ;;  %v941_v57 = vmul.f32 %v940_v14, %v939_v8  ;;  %v905_v20 = vstv %s2425_s5 }
 0x237   : > { %v904_v17 = vadd.f32 %v903_v10, %v902_v5  ;;  %v973_v18 = vrot.slane %v972_v13, 1 }
 0x238   : > { %803 = vrot.lane.b32.xlu1 %v801_v34, %s3320_s4  ;;  %854 = vrot.lane.b32.xlu0 %v852_v0, %s3322_s28  ;;  %v731_v47 = vrot.slane %v730_v7, 1  ;;  %v836_v0 = vmul.f32 %v835_v15, %v834_v9 }
 0x239   : > { %v906_v21 = vmul.f32 %v905_v20, %v904_v17  ;;  %v974_v22 = vadd.f32 %v973_v18, %v972_v13 }
 0x23a   : > { %v732_v16 = vadd.f32 %v731_v47, %v730_v7  ;;  %v975_v23 = vstv %s2429_s26 }
 0x23b   : > { %v976_v60 = vmul.f32 %v975_v23, %v974_v22 }
 0x23c   : > { %873 = vrot.lane.b32.xlu1 %v871_v39, %s3322_s28  ;;  %924 = vrot.lane.b32.xlu0 %v922_v2, %s3324_s2  ;;  %v734_v49 = vmul.f32 %v733_v55, %v732_v16 }
 0x23e   : > { %736 = vst.msk [vmem:[#allocation4] sm:$0x1] %vm735_vm9, %v734_v49 }
 0x240   : > { %943 = vrot.lane.b32.xlu1 %v941_v57, %s3324_s2  ;;  %838 = vrot.lane.b32.xlu0 %v836_v0, %s3323_s15 }
 0x244   : > { %959 = vrot.lane.b32.xlu1 %v957_v19, %s3326_s3  ;;  %908 = vrot.lane.b32.xlu0 %v906_v21, %s3325_s20 }
 0x248   : > { %978 = vrot.lane.b32.xlu0 %v976_v60, %s3326_s3 }
 0x292   : > { %v774_v61 = vpop.permute.xlu1 %773  ;;  %v739_v2 = vpop.permute.xlu0 %738 }
 0x293   : > { %777 = vst.msk [vmem:[#allocation2 + $0x10] sm:$0xff] %vm715_vm1, %v774_v61  ;;  %742 = vst.msk [vmem:[#allocation2 + $0x8] sm:$0xff] %vm715_vm1, %v739_v2 }
 0x296   : > { %v844_v24 = vpop.permute.xlu1 %843  ;;  %v809_v26 = vpop.permute.xlu0 %808 }
 0x297   : > { %847 = vst.msk [vmem:[#allocation2 + $0x20] sm:$0xff] %vm715_vm1, %v844_v24  ;;  %812 = vst.msk [vmem:[#allocation2 + $0x18] sm:$0xff] %vm715_vm1, %v809_v26 }
 0x29a   : > { %v914_v27 = vpop.permute.xlu1 %913  ;;  %v879_v11 = vpop.permute.xlu0 %878 }
 0x29b   : > { %917 = vst.msk [vmem:[#allocation2 + $0x30] sm:$0xff] %vm715_vm1, %v914_v27  ;;  %882 = vst.msk [vmem:[#allocation2 + $0x28] sm:$0xff] %vm715_vm1, %v879_v11 }
 0x29e   : > { %v820_v12 = vpop.permute.xlu1 %819  ;;  %v949_v19 = vpop.permute.xlu0 %948 }
 0x29f   : > { %823 = vst.msk [vmem:[#allocation3 + $0x18] sm:$0xff] %vm715_vm1, %v820_v12  ;;  %952 = vst.msk [vmem:[#allocation2 + $0x38] sm:$0xff] %vm715_vm1, %v949_v19 }
 0x2a2   : > { %v890_v28 = vpop.permute.xlu1 %889  ;;  %v750_v29 = vpop.permute.xlu0 %749 }
 0x2a3   : > { %893 = vst.msk [vmem:[#allocation3 + $0x28] sm:$0xff] %vm715_vm1, %v890_v28  ;;  %753 = vst.msk [vmem:[#allocation3 + $0x8] sm:$0xff] %vm715_vm1, %v750_v29 }
 0x2a6   : > { %v769_v30 = vpop.permute.xlu1 %768  ;;  %v785_v31 = vpop.permute.xlu0 %784 }
 0x2a7   : > { %772 = vst.msk [vmem:[#allocation4 + $0x1] sm:$0x1] %vm735_vm9, %v769_v30 }
 0x2a8   : > { %788 = vst.msk [vmem:[#allocation3 + $0x10] sm:$0xff] %vm715_vm1, %v785_v31 }
 0x2aa   : > { %v804_v32 = vpop.permute.xlu1 %803  ;;  %v855_v36 = vpop.permute.xlu0 %854 }
 0x2ab   : > { %807 = vst.msk [vmem:[#allocation4 + $0x2] sm:$0x1] %vm735_vm9, %v804_v32 }
 0x2ac   : > { %858 = vst.msk [vmem:[#allocation3 + $0x20] sm:$0xff] %vm715_vm1, %v855_v36 }
 0x2ae   : > { %v874_v38 = vpop.permute.xlu1 %873  ;;  %v925_v40 = vpop.permute.xlu0 %924 }
 0x2af   : > { %877 = vst.msk [vmem:[#allocation4 + $0x4] sm:$0x1] %vm735_vm9, %v874_v38 }
 0x2b0   : > { %928 = vst.msk [vmem:[#allocation3 + $0x30] sm:$0xff] %vm715_vm1, %v925_v40 }
 0x2b2   : > { %v944_v41 = vpop.permute.xlu1 %943  ;;  %v839_v42 = vpop.permute.xlu0 %838 }
 0x2b3   : > { %947 = vst.msk [vmem:[#allocation4 + $0x6] sm:$0x1] %vm735_vm9, %v944_v41  ;;  %842 = vst.msk [vmem:[#allocation4 + $0x3] sm:$0x1] %vm735_vm9, %v839_v42 }
 0x2b6   : > { %v960_v43 = vpop.permute.xlu1 %959  ;;  %v909_v25 = vpop.permute.xlu0 %908 }
 0x2b7   : > { %963 = vst.msk [vmem:[#allocation3 + $0x38] sm:$0xff] %vm715_vm1, %v960_v43 }
 0x2b8   : > { %912 = vst.msk [vmem:[#allocation4 + $0x5] sm:$0x1] %vm735_vm9, %v909_v25 }
 0x2ba   : > { %v979_v46 = vpop.permute.xlu0 %978 }
 0x2bb   : > { %982 = vst.msk [vmem:[#allocation4 + $0x7] sm:$0x1] %vm735_vm9, %v979_v46 }
 0x2bc PF: > { %v2926_v48 = vld [vmem:[#allocation12] sm:$0xff]   ;;  %v3327_v50 = vmov 0.0   ;;  %v2927_v51 = vld [vmem:[#allocation12 + $0x8] sm:$0xff]   ;;  %vm3328_vm10 = vmmov 0   ;;  %v2928_v54 = vld [vmem:[#allocation12 + $0x10] sm:$0xff]   ;;  %vm1126_vm11 = vcmask 130048  }
 0x2bd   : > { %2585 = vmatprep.subr.bf16.mxu0 %v3327_v50  ;;  %2605 = vmatprep.subr.bf16.mxu1 %v3327_v50  ;;  %v1118_v35 = vld [vmem:[#allocation2] sm:$0xff]  ;;  %v2930_v58 = vld [vmem:[#allocation12 + $0x20] sm:$0xff]   ;;  %v2931_v59 = vld [vmem:[#allocation12 + $0x28] sm:$0xff]   ;;  %s3329_s4 = smov 80   ;;  %s3330_s28 = smov 112   ;;  %vm2036_vm12 = vcmask 261248  }
 0x2be   : > { %2586 = vmatpush3.bf16.msra.mxu0 %v2926_v48  ;;  %2601 = vmatprep.mubr.msk.bf16.mxu0 %vm3328_vm10, %v3327_v50  ;;  %v2929_v56 = vld [vmem:[#allocation12 + $0x18] sm:$0xff]   ;;  %v1131_v37 = vsel %vm1126_vm11, %v1118_v35, 0  ;;  %v2932_v62 = vld [vmem:[#allocation12 + $0x30] sm:$0xff]   ;;  %v983_v1 = vld [vmem:[%s3766_s9] sm:$0xf]  ;;  %s3331_s9 = smov 64  }
 0x2bf   : > { %2587 = vmatprep.subr.bf16.mxu0 %v3327_v50  ;;  %2607 = vmatprep.mubr.msk.bf16.mxu1 %vm3328_vm10, %v3327_v50  ;;  %v2933_v63 = vld [vmem:[#allocation12 + $0x38] sm:$0xff]   ;;  %v1119_v3 = vld [vmem:[#allocation2 + $0x8] sm:$0xff]  ;;  %s3332_s15 = smov 96   ;;  %s3333_s21 = smov 32   ;;  %v1120_v4 = vld [vmem:[#allocation2 + $0x10] sm:$0xff]  ;;  %vm2042_vm13 = vcmask 392448  }
 0x2c0   : > { %2606 = vmatpush3.bf16.xpose.msra.mxu1 %v1131_v37  ;;  %v1177_v45 = vsel %vm1126_vm11, %v1119_v3, 0  ;;  %s3334_s2 = smov 48   ;;  %s3335_s20 = smov 16   ;;  %v1223_v7 = vsel %vm1126_vm11, %v1120_v4, 0  ;;  %v1121_v47 = vld [vmem:[#allocation2 + $0x18] sm:$0xff]  ;;  %v1122_v10 = vld [vmem:[#allocation2 + $0x20] sm:$0xff] }
 0x2c1   : > { %2611 = vmatprep.subr.bf16.mxu1 %v3327_v50  ;;  %v1269_v8 = vsel %vm1126_vm11, %v1121_v47, 0  ;;  %v1315_v14 = vsel %vm1126_vm11, %v1122_v10, 0  ;;  %v1123_v16 = vld [vmem:[#allocation2 + $0x28] sm:$0xff]  ;;  %v1124_v17 = vld [vmem:[#allocation2 + $0x30] sm:$0xff]  ;;  %v1125_v22 = vld [vmem:[#allocation2 + $0x38] sm:$0xff]  ;;  %vm2048_vm14 = vcmask 523648  }
 0x2c2   : > { %2588 = vmatpush3.bf16.msra.mxu0 %v2927_v51  ;;  %v1361_v57 = vsel %vm1126_vm11, %v1123_v16, 0  ;;  %v1407_v20 = vsel %vm1126_vm11, %v1124_v17, 0  ;;  %v1453_v60 = vsel %vm1126_vm11, %v1125_v22, 0  ;;  %s4338_s8 = sld [smem:[#allocation32_spill]]  ;;  %vm2054_vm15 = vcmask 654848   ;;  %s4339_s3 = sld [smem:[#allocation31_spill]] }
 0x2c3   : > { %2589 = vmatprep.subr.bf16.mxu0 %v3327_v50  ;;  %vm2060_vm0 = vcmask 786048   ;;  %vm2066_vm1 = vcmask 917248   ;;  %vm2072_vm2 = vcmask 1048448   ;;  %s4340_s5 = sld [smem:[#allocation41_spill]]  ;;  %p4343_p9 = scmp.ne.s32.totalorder %s4315_s22, 0 }
 0x2c6   : > { %2590 = vmatpush3.bf16.msra.mxu0 %v2928_v54 }
 0x2c7   : > { %2591 = vmatprep.subr.bf16.mxu0 %v3327_v50 }
 0x2c8   : > { %s2472_s7 = sshll.u32 %s4338_s8, 1 }
 0x2c9   : > { %s2200_s16 = sadd.s32 %s4339_s3, %s2472_s7  ;;  %s3336_s3 = smov [#allocation21]  }
 0x2ca   : > { %2592 = vmatpush3.bf16.msra.mxu0 %v2929_v56  ;;  %s2473_s26 = sshll.u32 %s2200_s16, 7  ;;  %s3164_s7 = sshll.u32 %s3336_s3, 4  ;;  %s3165_s7 = int_to_ptr.vmem [resolvable:$false] %s3164_s7 }
 0x2cb   : > { %2593 = vmatprep.subr.bf16.mxu0 %v3327_v50  ;;  %s3166_s16 = scalar_lea.vmem %s3165_s7, 256 }
 0x2ce   : > { %2594 = vmatpush3.bf16.msra.mxu0 %v2930_v58 }
 0x2cf   : > { %2595 = vmatprep.subr.bf16.mxu0 %v3327_v50 }
 0x2d2   : > { %2596 = vmatpush3.bf16.msra.mxu0 %v2931_v59 }
 0x2d3   : > { %2597 = vmatprep.subr.bf16.mxu0 %v3327_v50 }
 0x2d6   : > { %2598 = vmatpush3.bf16.msra.mxu0 %v2932_v62 }
 0x2d7   : > { %2599 = vmatprep.subr.bf16.mxu0 %v3327_v50 }
 0x2da   : > { %2600 = vmatpush3.bf16.msra.mxu0 %v2933_v63 }
 0x2db   : > { %2653 = vmatprep.subr.bf16.mxu0 %v3327_v50 }
 0x2dd   : > { %2602 = vmatmul.mubr.bf16.vlgmr.msra.gmra.mrb[0].mxu0 %v983_v1 }
 0x2de   : > { %2655 = vmatprep.mubr.msk.bf16.mxu0 %vm3328_vm10, %v3327_v50 }
 0x3b0   : > { %v1082_v33 = vpop.f32.mrb[0].mxu0 }
 0x3b1   : > { %1095 = vrot.lane.b32.xlu1 %v1082_v33, %s3329_s4  ;;  %1089 = vrot.lane.b32.xlu0 %v1082_v33, %s3330_s28  ;;  %v2603_v34 = vpop.f32.mrb[1].mxu0  ;;  %v1110_v44 = vpack.c.bf16 %v1082_v33, %v1082_v33 }
 0x3b2   : > { %v1085_v52 = vpop.f32.mrb[2].mxu0 }
 0x3b3   : > { %v2604_v53 = vpop.f32.mrb[3].mxu0  ;;  %2608 = vmatmul.mubr.msk.bf16.vlgmr.msra.gmra.mrb[0].mxu1 %vm1126_vm11, %v1110_v44 }
 0x3b4   : > { %2612 = vmatpush3.bf16.xpose.msra.mxu1 %v1177_v45  ;;  %2613 = vmatprep.mubr.msk.bf16.mxu1 %vm3328_vm10, %v3327_v50 }
 0x3b5   : > { %1098 = vrot.lane.b32.xlu1 %v1082_v33, %s3331_s9  ;;  %1092 = vrot.lane.b32.xlu0 %v1082_v33, %s3332_s15 }
 0x3b6   : > { %2617 = vmatprep.subr.bf16.mxu1 %v3327_v50 }
 0x3b9   : > { %1104 = vrot.lane.b32.xlu1 %v1082_v33, %s3333_s21  ;;  %1101 = vrot.lane.b32.xlu0 %v1082_v33, %s3334_s2 }
 0x3bd   : > { %1107 = vrot.lane.b32.xlu0 %v1082_v33, %s3335_s20 }
 0x423   : > { %v1090_v5 = vpop.permute.xlu0 %1089  ;;  %v1096_v9 = vpop.permute.xlu1 %1095 }
 0x424   : > { %v1111_v6 = vpack.c.bf16 %v1090_v5, %v1090_v5  ;;  %v1113_v13 = vpack.c.bf16 %v1096_v9, %v1096_v9 }
 0x426   : > { %2614 = vmatmul.mubr.msk.bf16.vlgmr.msra.gmra.mrb[4].mxu1 %vm1126_vm11, %v1111_v6 }
 0x427   : > { %2618 = vmatpush3.bf16.xpose.msra.mxu1 %v1223_v7  ;;  %2619 = vmatprep.mubr.msk.bf16.mxu1 %vm3328_vm10, %v3327_v50  ;;  %v1093_v39 = vpop.permute.xlu0 %1092  ;;  %v1099_v15 = vpop.permute.xlu1 %1098 }
 0x428   : > { %2623 = vmatprep.subr.bf16.mxu1 %v3327_v50  ;;  %v1112_v55 = vpack.c.bf16 %v1093_v39, %v1093_v39  ;;  %v1114_v49 = vpack.c.bf16 %v1099_v15, %v1099_v15  ;;  %v1624_v39 = vld [vmem:[#allocation3 + $0x8] sm:$0xff] }
 0x42b   : > { %v1102_v0 = vpop.permute.xlu0 %1101  ;;  %v1105_v21 = vpop.permute.xlu1 %1104 }
 0x42c   : > { %v1115_v18 = vpack.c.bf16 %v1102_v0, %v1102_v0  ;;  %v1116_v23 = vpack.c.bf16 %v1105_v21, %v1105_v21 }
 0x42e   : > { %2620 = vmatmul.mubr.msk.bf16.vlgmr.msra.gmra.mrb[8].mxu1 %vm1126_vm11, %v1112_v55  ;;  %v1623_v55 = vld [vmem:[#allocation3] sm:$0xff] }
 0x42f   : > { %2624 = vmatpush3.bf16.xpose.msra.mxu1 %v1269_v8  ;;  %2625 = vmatprep.mubr.msk.bf16.mxu1 %vm3328_vm10, %v3327_v50  ;;  %v1108_v61 = vpop.permute.xlu0 %1107 }
 0x430   : > { %2629 = vmatprep.subr.bf16.mxu1 %v3327_v50  ;;  %v1117_v2 = vpack.c.bf16 %v1108_v61, %v1108_v61  ;;  %2654 = vmatpush3.bf16.msra.mxu0 %v1623_v55 }
 0x431   : > { %2665 = vmatprep.subr.bf16.mxu0 %v3327_v50 }
 0x436   : > { %2626 = vmatmul.mubr.msk.bf16.vlgmr.msra.gmra.mrb[12].mxu1 %vm1126_vm11, %v1113_v13 }
 0x437   : > { %2630 = vmatpush3.bf16.xpose.msra.mxu1 %v1315_v14  ;;  %2631 = vmatprep.mubr.msk.bf16.mxu1 %vm3328_vm10, %v3327_v50 }
 0x438   : > { %2635 = vmatprep.subr.bf16.mxu1 %v3327_v50 }
 0x43e   : > { %2632 = vmatmul.mubr.msk.bf16.vlgmr.msra.gmra.mrb[16].mxu1 %vm1126_vm11, %v1114_v49 }
 0x43f   : > { %2636 = vmatpush3.bf16.xpose.msra.mxu1 %v1361_v57  ;;  %2637 = vmatprep.mubr.msk.bf16.mxu1 %vm3328_vm10, %v3327_v50 }
 0x440   : > { %2641 = vmatprep.subr.bf16.mxu1 %v3327_v50 }
 0x446   : > { %2638 = vmatmul.mubr.msk.bf16.vlgmr.msra.gmra.mrb[20].mxu1 %vm1126_vm11, %v1115_v18 }
 0x447   : > { %2642 = vmatpush3.bf16.xpose.msra.mxu1 %v1407_v20  ;;  %2643 = vmatprep.mubr.msk.bf16.mxu1 %vm3328_vm10, %v3327_v50 }
 0x448   : > { %2647 = vmatprep.subr.bf16.mxu1 %v3327_v50 }
 0x44e   : > { %2644 = vmatmul.mubr.msk.bf16.vlgmr.msra.gmra.mrb[24].mxu1 %vm1126_vm11, %v1116_v23 }
 0x44f   : > { %2648 = vmatpush3.bf16.xpose.msra.mxu1 %v1453_v60  ;;  %2649 = vmatprep.mubr.msk.bf16.mxu1 %vm3328_vm10, %v3327_v50 }
 0x450   : > { %2659 = vmatprep.subr.bf16.mxu1 %v3327_v50 }
 0x456   : > { %2650 = vmatmul.mubr.msk.bf16.vlgmr.msra.gmra.mrb[28].mxu1 %vm1126_vm11, %v1117_v2 }
 0x457   : > { %2661 = vmatprep.mubr.msk.bf16.mxu1 %vm3328_vm10, %v3327_v50  ;;  %2660 = vmatpush3.bf16.msra.mxu1 %v1624_v39 }
 0x458   : > { %2671 = vmatprep.subr.bf16.mxu1 %v3327_v50 }
 0x486   : > { %v4080_v24 = vpop.f32.mrb[0].mxu1 }
 0x487   : > { %v2609_v26 = vpop.f32.mrb[1].mxu1  ;;  %v1495_v27 = vsel %vm1126_vm11, %v4080_v24, 0.0  ;;  %v1519_v31 = vmul.f32 %v4080_v24, %v4080_v24 }
 0x488   : > { %1496 = vadd.xlane.f32.xlu1 %v1495_v27  ;;  %v1170_v11 = vpop.f32.mrb[2].mxu1 }
 0x489   : > { %v2610_v12 = vpop.f32.mrb[3].mxu1  ;;  %v1527_v40 = vsel %vm1126_vm11, %v1519_v31, 0.0 }
 0x4f9   : > { %v4084_v19 = vpop.f32.mrb[4].mxu1 }
 0x4fa   : > { %v2615_v28 = vpop.f32.mrb[5].mxu1  ;;  %v1498_v29 = vsel %vm1126_vm11, %v4084_v19, 0.0  ;;  %v1520_v30 = vmul.f32 %v4084_v19, %v4084_v19 }
 0x4fb   : > { %1499 = vadd.xlane.f32.xlu0 %v1498_v29  ;;  %v1216_v32 = vpop.f32.mrb[6].mxu1 }
 0x4fc   : > { %v2616_v36 = vpop.f32.mrb[7].mxu1  ;;  %v1530_v38 = vsel %vm1126_vm11, %v1520_v30, 0.0 }
 0x4fd   : > { %1531 = vadd.xlane.f32.xlu1 %v1530_v38 }
 0x4ff   : > { %1528 = vadd.xlane.f32.xlu0 %v1527_v40 }
 0x501   : > { %v4094_v41 = vpop.f32.mrb[8].mxu1 }
 0x502   : > { %v2621_v42 = vpop.f32.mrb[9].mxu1  ;;  %v1501_v43 = vsel %vm1126_vm11, %v4094_v41, 0.0  ;;  %v1521_v25 = vmul.f32 %v4094_v41, %v4094_v41 }
 0x503   : > { %1502 = vadd.xlane.f32.xlu0 %v1501_v43  ;;  %v1262_v46 = vpop.f32.mrb[10].mxu1 }
 0x504   : > { %v2622_v48 = vpop.f32.mrb[11].mxu1  ;;  %v1533_v51 = vsel %vm1126_vm11, %v1521_v25, 0.0 }
 0x507   : > { %1534 = vadd.xlane.f32.xlu0 %v1533_v51 }
 0x509   : > { %v4101_v54 = vpop.f32.mrb[12].mxu1 }
 0x50a   : > { %v2627_v35 = vpop.f32.mrb[13].mxu1  ;;  %v1504_v56 = vsel %vm1126_vm11, %v4101_v54, 0.0  ;;  %v1522_v37 = vmul.f32 %v4101_v54, %v4101_v54 }
 0x50b   : > { %1505 = vadd.xlane.f32.xlu1 %v1504_v56  ;;  %v1308_v58 = vpop.f32.mrb[14].mxu1 }
 0x50c   : > { %v2628_v59 = vpop.f32.mrb[15].mxu1  ;;  %v1536_v62 = vsel %vm1126_vm11, %v1522_v37, 0.0 }
 0x50f   : > { %1537 = vadd.xlane.f32.xlu1 %v1536_v62 }
 0x511   : > { %v4108_v63 = vpop.f32.mrb[16].mxu1 }
 0x512   : > { %v2633_v1 = vpop.f32.mrb[17].mxu1  ;;  %v1507_v3 = vsel %vm1126_vm11, %v4108_v63, 0.0  ;;  %v1523_v33 = vmul.f32 %v4108_v63, %v4108_v63 }
 0x513   : > { %1508 = vadd.xlane.f32.xlu0 %v1507_v3  ;;  %v1354_v34 = vpop.f32.mrb[18].mxu1 }
 0x514   : > { %v2634_v44 = vpop.f32.mrb[19].mxu1  ;;  %v1539_v45 = vsel %vm1126_vm11, %v1523_v33, 0.0 }
 0x515   : > { %v1497_v22 = vpop.xlane.xlu1 %1496  ;;  %v1626_v44 = vld [vmem:[#allocation3 + $0x18] sm:$0xff] }
 0x516   : > { %v1551_v60 = vmul.f32 0.0625, %v1497_v22 }
 0x517   : > { %1540 = vadd.xlane.f32.xlu0 %v1539_v45 }
 0x518   : > { %v1567_v12 = vmul.f32 %v1551_v60, %v1551_v60  ;;  %v1599_v37 = vsub.f32 %v4080_v24, %v1551_v60 }
 0x519   : > { %v4115_v52 = vpop.f32.mrb[20].mxu1 }
 0x51a   : > { %v2639_v53 = vpop.f32.mrb[21].mxu1  ;;  %v1510_v4 = vsel %vm1126_vm11, %v4115_v52, 0.0  ;;  %v1524_v5 = vmul.f32 %v4115_v52, %v4115_v52 }
 0x51b   : > { %1511 = vadd.xlane.f32.xlu1 %v1510_v4  ;;  %v1400_v6 = vpop.f32.mrb[22].mxu1 }
 0x51c   : > { %v2640_v7 = vpop.f32.mrb[23].mxu1  ;;  %v1542_v47 = vsel %vm1126_vm11, %v1524_v5, 0.0  ;;  %v1625_v5 = vld [vmem:[#allocation3 + $0x10] sm:$0xff] }
 0x51f   : > { %1543 = vadd.xlane.f32.xlu1 %v1542_v47 }
 0x521   : > { %v4124_v8 = vpop.f32.mrb[24].mxu1 }
 0x522   : > { %v2645_v9 = vpop.f32.mrb[25].mxu1  ;;  %v1513_v10 = vsel %vm1126_vm11, %v4124_v8, 0.0  ;;  %v1525_v13 = vmul.f32 %v4124_v8, %v4124_v8 }
 0x523   : > { %1514 = vadd.xlane.f32.xlu0 %v1513_v10  ;;  %v1446_v14 = vpop.f32.mrb[26].mxu1 }
 0x524   : > { %v2646_v15 = vpop.f32.mrb[27].mxu1  ;;  %v1545_v16 = vsel %vm1126_vm11, %v1525_v13, 0.0 }
 0x525   : > { %v1627_v15 = vld [vmem:[#allocation3 + $0x20] sm:$0xff] }
 0x527   : > { %1546 = vadd.xlane.f32.xlu0 %v1545_v16 }
 0x529   : > { %v4131_v49 = vpop.f32.mrb[28].mxu1 }
 0x52a   : > { %v2651_v57 = vpop.f32.mrb[29].mxu1  ;;  %v1516_v0 = vsel %vm1126_vm11, %v4131_v49, 0.0  ;;  %v1526_v17 = vmul.f32 %v4131_v49, %v4131_v49 }
 0x52b   : > { %1517 = vadd.xlane.f32.xlu1 %v1516_v0  ;;  %v1492_v18 = vpop.f32.mrb[30].mxu1 }
 0x52c   : > { %v2652_v20 = vpop.f32.mrb[31].mxu1  ;;  %v1548_v21 = vsel %vm1126_vm11, %v1526_v17, 0.0 }
 0x52f   : > { %1549 = vadd.xlane.f32.xlu1 %v1548_v21 }
 0x588   : > { %v1500_v23 = vpop.xlane.xlu0 %1499 }
 0x589   : > { %v1552_v61 = vmul.f32 0.0625, %v1500_v23 }
 0x58a   : > { %v1532_v2 = vpop.xlane.xlu1 %1531 }
 0x58b   : > { %v1568_v26 = vmul.f32 %v1552_v61, %v1552_v61  ;;  %v1560_v27 = vmul.f32 0.0625, %v1532_v2  ;;  %v1600_v35 = vsub.f32 %v4084_v19, %v1552_v61  ;;  %v1628_v61 = vld [vmem:[#allocation3 + $0x28] sm:$0xff] }
 0x58c   : > { %v1529_v11 = vpop.xlane.xlu0 %1528 }
 0x58d   : > { %v1576_v28 = vsub.f32 %v1560_v27, %v1568_v26  ;;  %v1559_v29 = vmul.f32 0.0625, %v1529_v11 }
 0x58f   : > { %v1584_v30 = vadd.f32 1e-08, %v1576_v28  ;;  %v1575_v31 = vsub.f32 %v1559_v29, %v1567_v12 }
 0x590   : > { %v1503_v32 = vpop.xlane.xlu0 %1502 }
 0x591   : > { %2942 = vrsqrt.f32 %v1584_v30  ;;  %v1583_v36 = vadd.f32 1e-08, %v1575_v31  ;;  %v1553_v38 = vmul.f32 0.0625, %v1503_v32 }
 0x593   : > { %2944 = vrsqrt.f32 %v1583_v36  ;;  %v1569_v42 = vmul.f32 %v1553_v38, %v1553_v38  ;;  %v1601_v24 = vsub.f32 %v4094_v41, %v1553_v38  ;;  %v1629_v36 = vld [vmem:[#allocation3 + $0x30] sm:$0xff] }
 0x594   : > { %v1535_v40 = vpop.xlane.xlu0 %1534 }
 0x595   : > { %v1561_v43 = vmul.f32 0.0625, %v1535_v40 }
 0x597   : > { %v1577_v25 = vsub.f32 %v1561_v43, %v1569_v42 }
 0x598   : > { %v1506_v46 = vpop.xlane.xlu1 %1505 }
 0x599   : > { %v1585_v48 = vadd.f32 1e-08, %v1577_v25  ;;  %v1554_v51 = vmul.f32 0.0625, %v1506_v46 }
 0x59b   : > { %v2943_v56 = vpop.eup %2942  ;;  %2946 = vrsqrt.f32 %v1585_v48  ;;  %v1570_v1 = vmul.f32 %v1554_v51, %v1554_v51  ;;  %v1602_v41 = vsub.f32 %v4101_v54, %v1554_v51 }
 0x59c   : > { %v1538_v58 = vpop.xlane.xlu1 %1537  ;;  %v1608_v59 = vmul.f32 %v2943_v56, %v1600_v35  ;;  %v1630_v56 = vld [vmem:[#allocation3 + $0x38] sm:$0xff] }
 0x59d   : > { %v2945_v62 = vpop.eup %2944  ;;  %v1562_v3 = vmul.f32 0.0625, %v1538_v58 }
 0x59e   : > { %v1616_v33 = vpack.c.bf16 %v1608_v59, %v1608_v59  ;;  %v1607_v34 = vmul.f32 %v2945_v62, %v1599_v37 }
 0x59f   : > { %v1578_v45 = vsub.f32 %v1562_v3, %v1570_v1 }
 0x5a0   : > { %2662 = vmatmul.mubr.msk.bf16.vlgmr.msra.gmra.mrb[32].mxu1 %vm1126_vm11, %v1616_v33  ;;  %v1509_v53 = vpop.xlane.xlu0 %1508  ;;  %v1615_v4 = vpack.c.bf16 %v1607_v34, %v1607_v34 }
 0x5a1   : > { %v1586_v6 = vadd.f32 1e-08, %v1578_v45  ;;  %v1555_v19 = vmul.f32 0.0625, %v1509_v53  ;;  %2672 = vmatpush3.bf16.msra.mxu1 %v1626_v44  ;;  %2673 = vmatprep.mubr.msk.bf16.mxu1 %vm3328_vm10, %v3327_v50  ;;  %v2447_v44 = vld [vmem:[#allocation4 + $0x1] ss:$0 sm:$0xff] }
 0x5a2   : > { %2656 = vmatmul.mubr.msk.bf16.vlgmr.msra.gmra.mrb[4].mxu0 %vm1126_vm11, %v1615_v4  ;;  %2683 = vmatprep.subr.bf16.mxu1 %v3327_v50  ;;  %v2446_v53 = vld [vmem:[#allocation4] ss:$0 sm:$0xff] }
 0x5a3   : > { %2948 = vrsqrt.f32 %v1586_v6  ;;  %2666 = vmatpush3.bf16.msra.mxu0 %v1625_v5  ;;  %2667 = vmatprep.mubr.msk.bf16.mxu0 %vm3328_vm10, %v3327_v50  ;;  %v1571_v47 = vmul.f32 %v1555_v19, %v1555_v19  ;;  %v1603_v54 = vsub.f32 %v4108_v63, %v1555_v19 }
 0x5a4   : > { %v1541_v7 = vpop.xlane.xlu0 %1540  ;;  %2677 = vmatprep.subr.bf16.mxu0 %v3327_v50 }
 0x5a5   : > { %v2947_v39 = vpop.eup %2946  ;;  %v1563_v55 = vmul.f32 0.0625, %v1541_v7 }
 0x5a6   : > { %v1609_v9 = vmul.f32 %v2947_v39, %v1601_v24 }
 0x5a7   : > { %v1579_v10 = vsub.f32 %v1563_v55, %v1571_v47  ;;  %v2448_v47 = vld [vmem:[#allocation4 + $0x2] ss:$0 sm:$0xff] }
 0x5a8   : > { %v1512_v13 = vpop.xlane.xlu1 %1511  ;;  %v1617_v14 = vpack.c.bf16 %v1609_v9, %v1609_v9 }
 0x5a9   : > { %v1587_v16 = vadd.f32 1e-08, %v1579_v10  ;;  %v1556_v57 = vmul.f32 0.0625, %v1512_v13 }
 0x5aa   : > { %2668 = vmatmul.mubr.msk.bf16.vlgmr.msra.gmra.mrb[8].mxu0 %vm1126_vm11, %v1617_v14 }
 0x5ab   : > { %2950 = vrsqrt.f32 %v1587_v16  ;;  %2678 = vmatpush3.bf16.msra.mxu0 %v1627_v15  ;;  %2679 = vmatprep.mubr.msk.bf16.mxu0 %vm3328_vm10, %v3327_v50  ;;  %v1572_v18 = vmul.f32 %v1556_v57, %v1556_v57  ;;  %v1604_v63 = vsub.f32 %v4115_v52, %v1556_v57  ;;  %v2449_v15 = vld [vmem:[#allocation4 + $0x3] ss:$0 sm:$0xff]  ;;  %v2934_v16 = vld [vmem:[#allocation16] sm:$0xff]  }
 0x5ac   : > { %v1544_v0 = vpop.xlane.xlu1 %1543  ;;  %2689 = vmatprep.subr.bf16.mxu0 %v3327_v50 }
 0x5ad   : > { %v2949_v17 = vpop.eup %2948  ;;  %v1564_v20 = vmul.f32 0.0625, %v1544_v0 }
 0x5ae   : > { %v1610_v21 = vmul.f32 %v2949_v17, %v1602_v41  ;;  %v2935_v41 = vld [vmem:[#allocation16 + $0x8] sm:$0xff]  }
 0x5af   : > { %v1580_v22 = vsub.f32 %v1564_v20, %v1572_v18 }
 0x5b0   : > { %v1515_v23 = vpop.xlane.xlu0 %1514  ;;  %v1618_v60 = vpack.c.bf16 %v1610_v21, %v1610_v21  ;;  %v2450_v21 = vld [vmem:[#allocation4 + $0x4] ss:$0 sm:$0xff] }
 0x5b1   : > { %v1588_v2 = vadd.f32 1e-08, %v1580_v22  ;;  %v1557_v26 = vmul.f32 0.0625, %v1515_v23  ;;  %v2936_v22 = vld [vmem:[#allocation16 + $0x10] sm:$0xff]  }
 0x5b2   : > { %2674 = vmatmul.mubr.msk.bf16.vlgmr.msra.gmra.mrb[36].mxu1 %vm1126_vm11, %v1618_v60  ;;  %v2937_v60 = vld [vmem:[#allocation16 + $0x18] sm:$0xff]  }
 0x5b3   : > { %2952 = vrsqrt.f32 %v1588_v2  ;;  %2684 = vmatpush3.bf16.msra.mxu1 %v1628_v61  ;;  %2685 = vmatprep.mubr.msk.bf16.mxu1 %vm3328_vm10, %v3327_v50  ;;  %v1573_v12 = vmul.f32 %v1557_v26, %v1557_v26  ;;  %v1605_v52 = vsub.f32 %v4124_v8, %v1557_v26 }
 0x5b4   : > { %v1547_v27 = vpop.xlane.xlu0 %1546  ;;  %2695 = vmatprep.subr.bf16.mxu1 %v3327_v50 }
 0x5b5   : > { %v2951_v11 = vpop.eup %2950  ;;  %v1565_v28 = vmul.f32 0.0625, %v1547_v27  ;;  %v2451_v27 = vld [vmem:[#allocation4 + $0x5] ss:$0 sm:$0xff] }
 0x5b6   : > { %v1611_v29 = vmul.f32 %v2951_v11, %v1603_v54  ;;  %v2938_v11 = vld [vmem:[#allocation16 + $0x20] sm:$0xff]  }
 0x5b7   : > { %v1581_v30 = vsub.f32 %v1565_v28, %v1573_v12  ;;  %v2939_v28 = vld [vmem:[#allocation16 + $0x28] sm:$0xff]  }
 0x5b8   : > { %v1518_v31 = vpop.xlane.xlu1 %1517  ;;  %v1619_v32 = vpack.c.bf16 %v1611_v29, %v1611_v29 }
 0x5b9   : > { %v1589_v38 = vadd.f32 1e-08, %v1581_v30  ;;  %v1558_v40 = vmul.f32 0.0625, %v1518_v31 }
 0x5ba   : > { %2680 = vmatmul.mubr.msk.bf16.vlgmr.msra.gmra.mrb[12].mxu0 %vm1126_vm11, %v1619_v32 }
 0x5bb   : > { %2954 = vrsqrt.f32 %v1589_v38  ;;  %2690 = vmatpush3.bf16.msra.mxu0 %v1629_v36  ;;  %2691 = vmatprep.mubr.msk.bf16.mxu0 %vm3328_vm10, %v3327_v50  ;;  %v1574_v25 = vmul.f32 %v1558_v40, %v1558_v40  ;;  %v1606_v1 = vsub.f32 %v4131_v49, %v1558_v40  ;;  %v2452_v36 = vld [vmem:[#allocation4 + $0x6] ss:$0 sm:$0xff]  ;;  %v2940_v38 = vld [vmem:[#allocation16 + $0x30] sm:$0xff]  }
 0x5bc   : > { %v1550_v42 = vpop.xlane.xlu1 %1549  ;;  %2701 = vmatprep.subr.bf16.mxu0 %v3327_v50 }
 0x5bd   : > { %v2953_v43 = vpop.eup %2952  ;;  %v1566_v46 = vmul.f32 0.0625, %v1550_v42 }
 0x5be   : > { %v1612_v48 = vmul.f32 %v2953_v43, %v1604_v63  ;;  %v2941_v63 = vld [vmem:[#allocation16 + $0x38] sm:$0xff]  }
 0x5bf   : > { %v1582_v51 = vsub.f32 %v1566_v46, %v1574_v25 }
 0x5c0   : > { %v1620_v35 = vpack.c.bf16 %v1612_v48, %v1612_v48  ;;  %v2453_v48 = vld [vmem:[#allocation4 + $0x7] ss:$0 sm:$0xff] }
 0x5c1   : > { %v1590_v37 = vadd.f32 1e-08, %v1582_v51 }
 0x5c2   : > { %2686 = vmatmul.mubr.msk.bf16.vlgmr.msra.gmra.mrb[40].mxu1 %vm1126_vm11, %v1620_v35 }
 0x5c3   : > { %2956 = vrsqrt.f32 %v1590_v37  ;;  %2696 = vmatpush3.bf16.msra.mxu1 %v1630_v56  ;;  %2697 = vmatprep.mubr.msk.bf16.mxu1 %vm3328_vm10, %v3327_v50 }
 0x5c5   : > { %v2955_v58 = vpop.eup %2954 }
 0x5c6   : > { %v1613_v59 = vmul.f32 %v2955_v58, %v1605_v52 }
 0x5c8   : > { %v1621_v62 = vpack.c.bf16 %v1613_v59, %v1613_v59 }
 0x5ca   : > { %2692 = vmatmul.mubr.msk.bf16.vlgmr.msra.gmra.mrb[16].mxu0 %vm1126_vm11, %v1621_v62 }
 0x5cb   : > { %2717 = vmatprep.mubr.msk.bf16.mxu0 %vm3328_vm10, %v3327_v50  ;;  %2702 = vmatpush3.bf16.msra.mxu0 %v2934_v16 }
 0x5cc   : > { %2703 = vmatprep.subr.bf16.mxu0 %v3327_v50 }
 0x5cd   : > { %v2957_v3 = vpop.eup %2956 }
 0x5ce   : > { %v1614_v33 = vmul.f32 %v2957_v3, %v1606_v1 }
 0x5cf   : > { %2704 = vmatpush3.bf16.msra.mxu0 %v2935_v41 }
 0x5d0   : > { %v1622_v34 = vpack.c.bf16 %v1614_v33, %v1614_v33  ;;  %2705 = vmatprep.subr.bf16.mxu0 %v3327_v50 }
 0x5d2   : > { %2698 = vmatmul.mubr.msk.bf16.vlgmr.msra.gmra.mrb[44].mxu1 %vm1126_vm11, %v1622_v34 }
 0x5d3   : > { %2706 = vmatpush3.bf16.msra.mxu0 %v2936_v22 }
 0x5d4   : > { %2707 = vmatprep.subr.bf16.mxu0 %v3327_v50 }
 0x5d7   : > { %2708 = vmatpush3.bf16.msra.mxu0 %v2937_v60 }
 0x5d8   : > { %2709 = vmatprep.subr.bf16.mxu0 %v3327_v50 }
 0x5db   : > { %2710 = vmatpush3.bf16.msra.mxu0 %v2938_v11 }
 0x5dc   : > { %2711 = vmatprep.subr.bf16.mxu0 %v3327_v50 }
 0x5df   : > { %2712 = vmatpush3.bf16.msra.mxu0 %v2939_v28 }
 0x5e0   : > { %2713 = vmatprep.subr.bf16.mxu0 %v3327_v50 }
 0x5e3   : > { %2714 = vmatpush3.bf16.msra.mxu0 %v2940_v38 }
 0x5e4   : > { %2715 = vmatprep.subr.bf16.mxu0 %v3327_v50 }
 0x5e7   : > { %2716 = vmatpush3.bf16.msra.mxu0 %v2941_v63 }
 0x673   : > { %v1767_v45 = vpop.f32.mrb[32].mxu1 }
 0x674   : > { %v1768_v4 = vadd.f32 %v2447_v44, %v1767_v45  ;;  %v2663_v8 = vpop.f32.mrb[33].mxu1  ;;  %v2462_v45 = vld [vmem:[%s4340_s5] ss:$0 sm:$0xff] }
 0x675   : > { %v1724_v5 = vpop.f32.mrb[4].mxu0  ;;  %v1770_v6 = vpop.f32.mrb[34].mxu1 }
 0x676   : > { %v1725_v19 = vadd.f32 %v2446_v53, %v1724_v5  ;;  %2033 = vrot.lane.b32.xlu0 %v1768_v4, %s3335_s20  ;;  %v2657_v24 = vpop.f32.mrb[5].mxu0  ;;  %v2664_v7 = vpop.f32.mrb[35].mxu1  ;;  %s2189_s20 = scalar_lea.sflag [#allocation8], %s3762_s1 }
 0x677   : > { %v1727_v39 = vpop.f32.mrb[6].mxu0 }
 0x678   : > { %2031 = vst.msk [vmem:[#allocation5] sm:$0xff] %vm1126_vm11, %v1725_v19  ;;  %v2658_v49 = vpop.f32.mrb[7].mxu0 }
 0x67d   : > { %v1810_v55 = vpop.f32.mrb[8].mxu0 }
 0x67e   : > { %v1811_v9 = vadd.f32 %v2448_v47, %v1810_v55  ;;  %v2669_v10 = vpop.f32.mrb[9].mxu0 }
 0x67f   : > { %v1813_v13 = vpop.f32.mrb[10].mxu0 }
 0x680   : > { %2039 = vrot.lane.b32.xlu1 %v1811_v9, %s3333_s21  ;;  %v2670_v14 = vpop.f32.mrb[11].mxu0 }
 0x685   : > { %v1853_v57 = vpop.f32.mrb[36].mxu1 }
 0x686   : > { %v1854_v0 = vadd.f32 %v2449_v15, %v1853_v57  ;;  %v2675_v17 = vpop.f32.mrb[37].mxu1 }
 0x687   : > { %v1856_v18 = vpop.f32.mrb[38].mxu1 }
 0x688   : > { %v2676_v20 = vpop.f32.mrb[39].mxu1  ;;  %2045 = vrot.lane.b32.xlu1 %v1854_v0, %s3334_s2 }
 0x68d   : > { %v1896_v23 = vpop.f32.mrb[12].mxu0 }
 0x68e   : > { %v1897_v61 = vadd.f32 %v2450_v21, %v1896_v23  ;;  %v2681_v2 = vpop.f32.mrb[13].mxu0 }
 0x68f   : > { %v1899_v26 = vpop.f32.mrb[14].mxu0 }
 0x690   : > { %2051 = vrot.lane.b32.xlu0 %v1897_v61, %s3331_s9  ;;  %v2682_v54 = vpop.f32.mrb[15].mxu0 }
 0x695   : > { %v1939_v12 = vpop.f32.mrb[40].mxu1 }
 0x696   : > { %v1940_v29 = vadd.f32 %v2451_v27, %v1939_v12  ;;  %v2687_v30 = vpop.f32.mrb[41].mxu1 }
 0x697   : > { %v1942_v31 = vpop.f32.mrb[42].mxu1 }
 0x698   : > { %v2688_v32 = vpop.f32.mrb[43].mxu1  ;;  %2057 = vrot.lane.b32.xlu1 %v1940_v29, %s3329_s4  ;;  %s2204_s4 = sshll.u32 %s3802_s23, 4  ;;  %s4199_s4 = int_to_ptr.vmem [resolvable:$true] %s2204_s4 }
 0x699   : > { %s3160_s8 = scalar_lea.vmem %s4199_s4, 128  ;;  %p3167_p5 = scmp.lt.s32.totalorder %s4199_s4, %s3165_s7 }
 0x69a   : > { %p3161_p7 = scmp.ne.s32.totalorder %s4199_s4, %s3160_s8  ;;  %p3168_p8 = scmp.lt.s32.totalorder %s3166_s16, %s3160_s8 }
 0x69c   : > { %p3162_p13 = pnand %p3161_p7, %p4343_p9  ;;  %p3169_p0 = por %p3168_p8, %p3167_p5 }
 0x69d   : > { %v1982_v40 = vpop.f32.mrb[16].mxu0 }
 0x69e   : > { %v1983_v42 = vadd.f32 %v2452_v36, %v1982_v40  ;;  %v2693_v43 = vpop.f32.mrb[17].mxu0  ;;  %p3163_p3 = pneg %p3162_p13 }
 0x69f   : > { %v1985_v25 = vpop.f32.mrb[18].mxu0 }
 0x6a0   : > { %2063 = vrot.lane.b32.xlu0 %v1983_v42, %s3332_s15  ;;  %v2694_v46 = vpop.f32.mrb[19].mxu0  ;;  %s4341_s15 = sld [smem:[#allocation44_spill]]  ;;  %p3170_p1 = pnand %p3169_p0, %p3163_p3 }
 0x6a5   : > { %v2025_v51 = vpop.f32.mrb[44].mxu1 }
 0x6a6   : > { %v2026_v35 = vadd.f32 %v2453_v48, %v2025_v51  ;;  %v2699_v56 = vpop.f32.mrb[45].mxu1  ;;  %s4342_s21 = smov %s4341_s15  ;;  %s4197_s2 = scalar_lea.hbm %s4341_s15, %s2473_s26 }
 0x6a7   : > { %v2028_v37 = vpop.f32.mrb[46].mxu1 }
 0x6a8   : > { %v2700_v52 = vpop.f32.mrb[47].mxu1  ;;  %2069 = vrot.lane.b32.xlu1 %v2026_v35, %s3330_s28 }
 0x6e8   : > { %v2034_v58 = vpop.permute.xlu0 %2033 }
 0x6e9   : > { %2037 = vst.msk [vmem:[#allocation5] sm:$0xff] %vm2036_vm12, %v2034_v58 }
 0x6f2   : > { %v2040_v59 = vpop.permute.xlu1 %2039 }
 0x6f3   : > { %2043 = vst.msk [vmem:[#allocation5] sm:$0xff] %vm2042_vm13, %v2040_v59 }
 0x6fa   : > { %v2046_v50 = vpop.permute.xlu1 %2045 }
 0x6fb   : > { %2049 = vst.msk [vmem:[#allocation5] sm:$0xff] %vm2048_vm14, %v2046_v50 }
 0x702   : > { %v2052_v62 = vpop.permute.xlu0 %2051 }
 0x703   : > { %2055 = vst.msk [vmem:[#allocation5] sm:$0xff] %vm2054_vm15, %v2052_v62 }
 0x70a   : > { %v2058_v1 = vpop.permute.xlu1 %2057 }
 0x70b   : > { %2061 = vst.msk [vmem:[#allocation5] sm:$0xff] %vm2060_vm0, %v2058_v1 }
 0x712   : > { %v2064_v3 = vpop.permute.xlu0 %2063 }
 0x713   : > { %2067 = vst.msk [vmem:[#allocation5] sm:$0xff] %vm2066_vm1, %v2064_v3 }
 0x71a   : > { %v2070_v33 = vpop.permute.xlu1 %2069 }
 0x71b   : > { %2073 = vst.msk [vmem:[#allocation5] sm:$0xff] %vm2072_vm2, %v2070_v33 }
 0x722   : > { %v2074_v34 = vld [vmem:[#allocation5] sm:$0xff] }
 0x723   : > { %v2075_v44 = vpack.c.bf16 %v2074_v34, %v2074_v34 }
 0x725   : > { %2718 = vmatmul.mubr.bf16.vlgmr.msra.gmra.mrb[20].mxu0 %v2075_v44 }
 0x7f8   : > { %v2181_v53 = vpop.f32.mrb[20].mxu0 }
 0x7f9   : > { %v2182_v4 = vadd.f32 %v2462_v45, %v2181_v53  ;;  %v2719_v8 = vpop.f32.mrb[21].mxu0 }
 0x7fa   : > { %v2184_v5 = vpop.f32.mrb[22].mxu0 }
 0x7fb   : > { %2187 = vst [vmem:[%s3802_s23] sm:$0xff] %v2182_v4  ;;  %v2720_v6 = vpop.f32.mrb[23].mxu0 }
 0x7fc   : > { %3173 = shalt.err (!%p3170_p1)
}
 0x7fd   : > { %s3174_s1 = scalar_lea.hbm %s4197_s2, 128  ;;  %s3178_s29 = scalar_lea.hbm %s4342_s21, 512 }
 0x7fe   : > { %p3175_p12 = scmp.ne.s32.totalorder %s4197_s2, %s3174_s1  ;;  %p3179_p6 = scmp.lt.u32.totalorder %s4197_s2, %s4342_s21 }
 0x7ff   : > { %p3180_p11 = scmp.lt.u32.totalorder %s3178_s29, %s3174_s1  ;;  %p3182_p7 = scmp.lt.u32.totalorder %s3174_s1, %s4197_s2 }
 0x800   : > { %p3176_p2 = pnand %p3175_p12, %p4343_p9 }
 0x801   : > { %p3181_p10 = por %p3180_p11, %p3179_p6 }
 0x802   : > { %p3177_p4 = pneg %p3176_p2 }
 0x803   : > { %p3183_p13 = por %p3182_p7, %p3181_p10 }
 0x805   : > { %p3184_p3 = pnand %p3183_p13, %p3177_p4 }
 0x807   : > { %3187 = shalt.err (!%p3184_p3)
}
 0x808   : > { %2749 = dma.vmem_to_hbm [thread:$0]  (%p4343_p9), %s4199_s4, 128, %s4197_s2, %s2189_s20  }
 0x809 PF: > { %p2794_p5 = scmp.ge.s32.totalorder %s3306_s19, 2  ;;  %s2216_s28 = sand.u32 1, %s3278_s12  }
 0x80a   : > { %p4344_p8 = scmp.ne.s32.totalorder %s4316_s0, 0  ;;  %s2217_s9 = scalar_lea.sflag [#allocation8], %s2216_s28 }
 0x80c   : > { %p2778_p0 = pnand %p2794_p5, %p4344_p8 }
 0x80e   : > { %3261 = dma.done.wait (!%p2778_p0), %s2217_s9, 128  }
 0x80f   : > { %3263 = vsyncadd (!%p2778_p0), %s2217_s9, 4294967168  ;;  %s32_s19 = sadd.s32 1, %s3306_s19   ;;  %s4345_s22 = smov %s3639_s30 }
 0x810   : > { %p29_p1 = scmp.ge.s32.totalorder %s32_s19, 6   ;;  %s4346_s4 = sld [smem:[#allocation34_spill]] }
 0x811   : > { %s4347_s30 = smov %s3270_s10  ;;  %s4348_s10 = smov %s3274_s11 }
 0x812   : > { %s4349_s11 = smov %s3636_s6  ;;  %s4350_s12 = smov %s3282_s13 }
 0x813   : > { %s4351_s13 = smov %s3286_s14  ;;  %s4352_s14 = smov %s4345_s22 }
 0x814   : > { %s4353_s15 = smov %s3298_s17  ;;  %s4354_s16 = smov %s3302_s18 }
 0x815   : > { %s4355_s17 = smov %s4358_s24  ;;  %31 = sbr.rel (!%p29_p1) target bundleno = 26 (0x1a), region = 164 }
 0x816   : > { %s4356_s18 = smov %s4346_s4 }
 0x81c   :  { %2222 = vsyncpa [#allocation7], 1 }
 0x81d   :  { %2224 = vsyncpa [#allocation7 + $0x1], 1 }
 0x81e   :  { %2225 = vsyncpa [#allocation11], 1 }
 0x81f   :  { %2227 = vsyncpa [#allocation11 + $0x1], 1 }
 0x820   :  { %2228 = vsyncpa [#allocation14], 1 }
 0x821   :  { %2229 = vsyncpa [#allocation17], 1 }
 0x822   :  { %2230 = vsyncpa [#allocation8], 1 }
 0x823   :  { %2232 = vsyncpa [#allocation8 + $0x1], 1 }
 0x824   :  { %2233 = vsyncpa [#allocation9], 1 }
 0x825   :  { %2235 = vsyncpa [#allocation9 + $0x1], 1 }
 0x826   :  { %2236 = vsyncpa [#allocation20], 1 }

</bundles_post_ra>
